<compile_context>
chip_gen: v6e
topology: v6e:2x2x1
jax: 0.10.0
libtpu: 0.0.40
codegen_flags: <defaults>
</compile_context>

<pallas_src>
import jax
import jax.numpy as jnp
import numpy as np
from jax.experimental import pallas as pl
from jax.experimental.pallas import tpu as pltpu


def _round_up(n, m):
    return ((n + m - 1) // m) * m


def ar_model_kernel(x_ref, w_ih_ref, b_ih_ref, w_hh_ref, b_hh_ref,
                    w_dec_ref, b_dec_ref, out_ref):
    """All operands are padded/lane-aligned by the wrapper.

    x_ref:     (T*Bp, I)   encoder input, row index = t*Bp + b (batch padded to Bp=8 sublanes)
    w_ih_ref:  (I, EW)     cols [0,3H) = W_ih^T, rest zero              (EW = 128-aligned)
    b_ih_ref:  (1, EW)
    w_hh_ref:  (H, EW)     cols [0,3H) = W_hh^T, rest zero
    b_hh_ref:  (1, EW)
    w_dec_ref: (H, 2*CH)   chunk0 = [W_lin^T W_ih^T | W_lin^T | 0], chunk1 = [W_hh^T | 0]
    b_dec_ref: (1, 2*CH)
    out_ref:   (L, Bp, CH) decode chunk0 per step; y = lanes [3H, 3H+I)
    """
    H = w_hh_ref.shape[0]
    EW = w_hh_ref.shape[1]
    L, BP, CH = out_ref.shape
    T = x_ref.shape[0] // BP
    mxu_dtype = w_hh_ref.dtype                      # f32 or bf16 (wrapper's choice)

    w_hh = w_hh_ref[...]                            # (H, EW)
    w_dec = w_dec_ref[...]                          # (H, 2*CH)
    # Hoisted bias broadcasts (done once; reused by every unrolled iteration).
    b_hh = jnp.broadcast_to(b_hh_ref[...], (BP, EW))
    b_dec = jnp.broadcast_to(b_dec_ref[...], (BP, 2 * CH))

    def gru_gates(gi, gh, h):
        # gi, gh: (BP, >=3H) f32, PyTorch gate order [r | z | n]; identical lane offsets in both.
        r = jax.nn.sigmoid(gi[:, :H] + gh[:, :H])
        z = jax.nn.sigmoid(gi[:, H:2 * H] + gh[:, H:2 * H])
        n = jnp.tanh(gi[:, 2 * H:3 * H] + r * gh[:, 2 * H:3 * H])
        return (1.0 - z) * n + z * h

    # ---- encoder: input projection as one batched matmul, off the recurrent path ----
    gi_all = (jnp.dot(x_ref[...], w_ih_ref[...], preferred_element_type=jnp.float32)
              + b_ih_ref[...])                                          # (T*Bp, EW), f32

    h = jnp.zeros((BP, H), dtype=jnp.float32)
    for t in range(T):                                                  # tiny static trip count
        gh = jnp.dot(h.astype(mxu_dtype), w_hh,
                     preferred_element_type=jnp.float32) + b_hh
        h = gru_gates(gi_all[t * BP:(t + 1) * BP, :], gh, h)            # aligned (8, EW) slice

    # ---- decoder: one fused, lane-aligned matmul per step ----
    # g = [ gi | y | 0 || gh | 0 ]; iteration k's y slice is linear(h_k):
    #   k == 0 -> seed y_0 (not stored); k >= 1 -> output_seq[k-1].
    chunks = []
    for k in range(L + 1):
        g = jnp.dot(h.astype(mxu_dtype), w_dec,
                    preferred_element_type=jnp.float32) + b_dec         # (BP, 2*CH), f32
        if k > 0:
            chunks.append(g[:, :CH])                 # whole-vreg view; y lives at [3H, 3H+I)
        if k < L:
            gi = g[:, :3 * H]                        # lane offset 0 of chunk0
            gh = g[:, CH:CH + 3 * H]                 # lane offset 0 of chunk1 -> rotate-free adds
            h = gru_gates(gi, gh, h)

    # Single consolidated lane-dense store (off the h-dependence chain).
    out_ref[...] = jnp.stack(chunks, axis=0).astype(out_ref.dtype)      # (L, Bp, CH)


def ar_model_forward(x, params, target_seq_len, *, use_bf16_mxu=False):
    """x: (B, T, I) float32; params in PyTorch layout. Returns (B, target_seq_len, I) float32."""
    B, T, I = x.shape
    H = params["weight_hh"].shape[1]
    L = target_seq_len
    hp = jax.lax.Precision.HIGHEST

    w_ih_t = jnp.asarray(params["weight_ih"], jnp.float32).T            # (I, 3H)
    w_hh_t = jnp.asarray(params["weight_hh"], jnp.float32).T            # (H, 3H)
    b_ih = jnp.asarray(params["bias_ih"], jnp.float32)                  # (3H,)
    b_hh = jnp.asarray(params["bias_hh"], jnp.float32)                  # (3H,)
    w_lin_t = jnp.asarray(params["lin_w"], jnp.float32).T               # (H, I)
    b_lin = jnp.asarray(params["lin_b"], jnp.float32)                   # (I,)

    BP = _round_up(B, 8)                             # sublane-pad the batch
    EW = max(128, _round_up(3 * H, 128))             # encoder gate width (lane-aligned)
    CH = max(128, _round_up(3 * H + I, 128))         # one decode chunk (lane-aligned)
    Y_OFF = 3 * H                                    # y columns inside chunk0

    # Encoder weights, zero-padded to EW lanes.
    w_ih_pad = jnp.zeros((I, EW), jnp.float32).at[:, :3 * H].set(w_ih_t)
    b_ih_pad = jnp.zeros((1, EW), jnp.float32).at[0, :3 * H].set(b_ih)
    w_hh_pad = jnp.zeros((H, EW), jnp.float32).at[:, :3 * H].set(w_hh_t)
    b_hh_pad = jnp.zeros((1, EW), jnp.float32).at[0, :3 * H].set(b_hh)

    # Fused, lane-aligned decode weight: chunk0 = [gi | y | 0], chunk1 = [gh | 0].
    w_gi = jnp.dot(w_lin_t, w_ih_t, precision=hp)                       # (H, 3H)
    b_gi = jnp.dot(b_lin, w_ih_t, precision=hp) + b_ih                  # (3H,)
    w_dec = jnp.zeros((H, 2 * CH), jnp.float32)
    w_dec = w_dec.at[:, :3 * H].set(w_gi)
    w_dec = w_dec.at[:, Y_OFF:Y_OFF + I].set(w_lin_t)
    w_dec = w_dec.at[:, CH:CH + 3 * H].set(w_hh_t)
    b_dec = jnp.zeros((1, 2 * CH), jnp.float32)
    b_dec = b_dec.at[0, :3 * H].set(b_gi)
    b_dec = b_dec.at[0, Y_OFF:Y_OFF + I].set(b_lin)
    b_dec = b_dec.at[0, CH:CH + 3 * H].set(b_hh)

    # Layout plumbing only: (B, T, I) -> (T*Bp, I) with batch sublane-padded, so every
    # per-timestep slice in the kernel is an aligned 8-sublane group.
    x_tbi = jnp.transpose(x.astype(jnp.float32), (1, 0, 2))             # (T, B, I)
    x_pad = jnp.zeros((T, BP, I), jnp.float32).at[:, :B, :].set(x_tbi)
    x2d = x_pad.reshape(T * BP, I)

    if use_bf16_mxu:
        # bf16 MXU operands (single-pass matmuls); accumulation & gate math remain f32.
        x2d = x2d.astype(jnp.bfloat16)
        w_ih_pad = w_ih_pad.astype(jnp.bfloat16)
        w_hh_pad = w_hh_pad.astype(jnp.bfloat16)
        w_dec = w_dec.astype(jnp.bfloat16)

    vmem = pl.BlockSpec(memory_space=pltpu.MemorySpace.VMEM)
    out_chunks = pl.pallas_call(
        ar_model_kernel,
        out_shape=jax.ShapeDtypeStruct((L, BP, CH), jnp.float32),
        in_specs=[vmem] * 7,
        out_specs=vmem,
    )(x2d, w_ih_pad, b_ih_pad, w_hh_pad, b_hh_pad, w_dec, b_dec)

    # (L, Bp, CH) -> (B, L, I): pick the real batch rows and the y lanes.
    return jnp.transpose(out_chunks[:, :B, Y_OFF:Y_OFF + I], (1, 0, 2))


# -------------------- pure-JAX reference (unfused; mirrors the PyTorch op order) ---------------
def _ref_forward(x, params, target_seq_len):
    H = params["weight_hh"].shape[1]
    w_ih_t = params["weight_ih"].T
    w_hh_t = params["weight_hh"].T
    b_ih = params["bias_ih"]
    b_hh = params["bias_hh"]
    w_lin_t = params["lin_w"].T
    b_lin = params["lin_b"]

    def step(xt, h):
        gi = xt @ w_ih_t + b_ih
        gh = h @ w_hh_t + b_hh
        r = jax.nn.sigmoid(gi[:, :H] + gh[:, :H])
        z = jax.nn.sigmoid(gi[:, H:2 * H] + gh[:, H:2 * H])
        n = jnp.tanh(gi[:, 2 * H:] + r * gh[:, 2 * H:])
        return (1.0 - z) * n + z * h

    B, T, I = x.shape
    h = jnp.zeros((B, H), jnp.float32)
    for t in range(T):
        h = step(x[:, t, :], h)
    y = h @ w_lin_t + b_lin
    outs = []
    for _ in range(target_seq_len):
        h = step(y, h)
        y = h @ w_lin_t + b_lin
        outs.append(y)
    return jnp.stack(outs, axis=1)


def _init_params(key, input_size, hidden_size):
    """Deterministic params, PyTorch default-init style (uniform +/- 1/sqrt(fan))."""
    ks = jax.random.split(key, 6)
    kH = 1.0 / np.sqrt(hidden_size)
    kL = 1.0 / np.sqrt(hidden_size)
    u = lambda k, shape, s: jax.random.uniform(k, shape, jnp.float32, -s, s)
    return {
        "weight_ih": u(ks[0], (3 * hidden_size, input_size), kH),
        "weight_hh": u(ks[1], (3 * hidden_size, hidden_size), kH),
        "bias_ih": u(ks[2], (3 * hidden_size,), kH),
        "bias_hh": u(ks[3], (3 * hidden_size,), kH),
        "lin_w": u(ks[4], (input_size, hidden_size), kL),
        "lin_b": u(ks[5], (input_size,), kL),
    }


if __name__ == "__main__":
    B, T, INPUT, HIDDEN = 2, 8, 4, 32
    TARGET_SEQ_LEN = 6

    key = jax.random.PRNGKey(0)
    kx, kp = jax.random.split(key)
    x = jax.random.normal(kx, (B, T, INPUT), jnp.float32)
    params = _init_params(kp, INPUT, HIDDEN)

    ref = jax.block_until_ready(_ref_forward(x, params, TARGET_SEQ_LEN))

    # Default path: f32 MXU operands -> preserves the PyTorch f32 forward to tight tolerance.
    out = jax.block_until_ready(ar_model_forward(x, params, TARGET_SEQ_LEN))
    assert out.shape == (B, TARGET_SEQ_LEN, INPUT)
    np.testing.assert_allclose(np.asarray(out), np.asarray(ref), rtol=5e-4, atol=1e-5)

    # Fast path: bf16 MXU operands (single-pass MXU).  Validated at a loose bound because bf16
    # operand quantization drifts ~1e-3..1e-2 through the 14-step recurrence (per the review).
    out_bf16 = jax.block_until_ready(
        ar_model_forward(x, params, TARGET_SEQ_LEN, use_bf16_mxu=True))
    np.testing.assert_allclose(np.asarray(out_bf16), np.asarray(ref), rtol=5e-2, atol=5e-2)

    print("KERNEL_OK")
</pallas_src>

<mosaic_0001>
module attributes {stable_mosaic.version = 11 : i64} {
  func.func @ar_model_kernel(%arg0: memref<64x4xf32, #tpu.memory_space<vmem>>, %arg1: memref<4x128xf32, #tpu.memory_space<vmem>>, %arg2: memref<1x128xf32, #tpu.memory_space<vmem>>, %arg3: memref<32x128xf32, #tpu.memory_space<vmem>>, %arg4: memref<1x128xf32, #tpu.memory_space<vmem>>, %arg5: memref<32x256xf32, #tpu.memory_space<vmem>>, %arg6: memref<1x256xf32, #tpu.memory_space<vmem>>, %arg7: memref<6x8x128xf32, #tpu.memory_space<vmem>>) attributes {dimension_semantics = [], scalar_prefetch = 0 : i64, scratch_operands = 0 : i64, tpu.core_type = #tpu.core_type<tc>} {
    %c0 = arith.constant 0 : index
    %c0_0 = arith.constant 0 : index
    %0 = vector.load %arg3[%c0, %c0_0] : memref<32x128xf32, #tpu.memory_space<vmem>>, vector<32x128xf32>
    %c0_1 = arith.constant 0 : index
    %c0_2 = arith.constant 0 : index
    %1 = vector.load %arg5[%c0_1, %c0_2] : memref<32x256xf32, #tpu.memory_space<vmem>>, vector<32x256xf32>
    %c0_3 = arith.constant 0 : index
    %c0_4 = arith.constant 0 : index
    %2 = vector.load %arg4[%c0_3, %c0_4] : memref<1x128xf32, #tpu.memory_space<vmem>>, vector<1x128xf32>
    %3 = vector.shape_cast %2 : vector<1x128xf32> to vector<1x128xf32>
    %4 = vector.broadcast %3 : vector<1x128xf32> to vector<8x128xf32>
    %c0_5 = arith.constant 0 : index
    %c0_6 = arith.constant 0 : index
    %5 = vector.load %arg6[%c0_5, %c0_6] : memref<1x256xf32, #tpu.memory_space<vmem>>, vector<1x256xf32>
    %6 = vector.shape_cast %5 : vector<1x256xf32> to vector<1x256xf32>
    %7 = vector.broadcast %6 : vector<1x256xf32> to vector<8x256xf32>
    %c0_7 = arith.constant 0 : index
    %c0_8 = arith.constant 0 : index
    %8 = vector.load %arg0[%c0_7, %c0_8] : memref<64x4xf32, #tpu.memory_space<vmem>>, vector<64x4xf32>
    %c0_9 = arith.constant 0 : index
    %c0_10 = arith.constant 0 : index
    %9 = vector.load %arg1[%c0_9, %c0_10] : memref<4x128xf32, #tpu.memory_space<vmem>>, vector<4x128xf32>
    %cst = arith.constant dense<0.000000e+00> : vector<64x128xf32>
    %10 = tpu.matmul %8, %9, %cst {dimension_numbers = #tpu.dot_dimension_numbers<[1], [0], [0], [1], [0, 0, 1, 1], [], []>} : vector<64x4xf32>, vector<4x128xf32>, vector<64x128xf32> -> vector<64x128xf32>
    %c0_11 = arith.constant 0 : index
    %c0_12 = arith.constant 0 : index
    %11 = vector.load %arg2[%c0_11, %c0_12] : memref<1x128xf32, #tpu.memory_space<vmem>>, vector<1x128xf32>
    %12 = vector.broadcast %11 : vector<1x128xf32> to vector<64x128xf32>
    %13 = arith.addf %10, %12 : vector<64x128xf32>
    %cst_13 = arith.constant 0.000000e+00 : f32
    %14 = vector.broadcast %cst_13 : f32 to vector<8x32xf32>
    %cst_14 = arith.constant dense<0.000000e+00> : vector<8x128xf32>
    %15 = tpu.matmul %14, %0, %cst_14 {dimension_numbers = #tpu.dot_dimension_numbers<[1], [0], [0], [1], [0, 0, 1, 1], [], []>} : vector<8x32xf32>, vector<32x128xf32>, vector<8x128xf32> -> vector<8x128xf32>
    %16 = arith.addf %15, %4 : vector<8x128xf32>
    %17 = vector.extract_strided_slice %13 {offsets = [0, 0], sizes = [8, 128], strides = [1, 1]} : vector<64x128xf32> to vector<8x128xf32>
    %18 = vector.extract_strided_slice %17 {offsets = [0, 0], sizes = [8, 32], strides = [1, 1]} : vector<8x128xf32> to vector<8x32xf32>
    %19 = vector.extract_strided_slice %16 {offsets = [0, 0], sizes = [8, 32], strides = [1, 1]} : vector<8x128xf32> to vector<8x32xf32>
    %20 = arith.addf %18, %19 : vector<8x32xf32>
    %21 = arith.negf %20 : vector<8x32xf32>
    %22 = math.exp %21 : vector<8x32xf32>
    %cst_15 = arith.constant 1.000000e+00 : f32
    %23 = vector.broadcast %cst_15 : f32 to vector<8x32xf32>
    %24 = arith.addf %23, %22 : vector<8x32xf32>
    %25 = arith.divf %23, %24 : vector<8x32xf32>
    %26 = vector.extract_strided_slice %17 {offsets = [0, 32], sizes = [8, 32], strides = [1, 1]} : vector<8x128xf32> to vector<8x32xf32>
    %27 = vector.extract_strided_slice %16 {offsets = [0, 32], sizes = [8, 32], strides = [1, 1]} : vector<8x128xf32> to vector<8x32xf32>
    %28 = arith.addf %26, %27 : vector<8x32xf32>
    %29 = arith.negf %28 : vector<8x32xf32>
    %30 = math.exp %29 : vector<8x32xf32>
    %cst_16 = arith.constant 1.000000e+00 : f32
    %31 = vector.broadcast %cst_16 : f32 to vector<8x32xf32>
    %32 = arith.addf %31, %30 : vector<8x32xf32>
    %33 = arith.divf %31, %32 : vector<8x32xf32>
    %34 = vector.extract_strided_slice %17 {offsets = [0, 64], sizes = [8, 32], strides = [1, 1]} : vector<8x128xf32> to vector<8x32xf32>
    %35 = vector.extract_strided_slice %16 {offsets = [0, 64], sizes = [8, 32], strides = [1, 1]} : vector<8x128xf32> to vector<8x32xf32>
    %36 = arith.mulf %25, %35 : vector<8x32xf32>
    %37 = arith.addf %34, %36 : vector<8x32xf32>
    %38 = math.tanh %37 : vector<8x32xf32>
    %cst_17 = arith.constant 1.000000e+00 : f32
    %39 = vector.broadcast %cst_17 : f32 to vector<8x32xf32>
    %40 = arith.subf %39, %33 : vector<8x32xf32>
    %41 = arith.mulf %40, %38 : vector<8x32xf32>
    %42 = arith.mulf %33, %14 : vector<8x32xf32>
    %43 = arith.addf %41, %42 : vector<8x32xf32>
    %cst_18 = arith.constant dense<0.000000e+00> : vector<8x128xf32>
    %44 = tpu.matmul %43, %0, %cst_18 {dimension_numbers = #tpu.dot_dimension_numbers<[1], [0], [0], [1], [0, 0, 1, 1], [], []>} : vector<8x32xf32>, vector<32x128xf32>, vector<8x128xf32> -> vector<8x128xf32>
    %45 = arith.addf %44, %4 : vector<8x128xf32>
    %46 = vector.extract_strided_slice %13 {offsets = [8, 0], sizes = [8, 128], strides = [1, 1]} : vector<64x128xf32> to vector<8x128xf32>
    %47 = vector.extract_strided_slice %46 {offsets = [0, 0], sizes = [8, 32], strides = [1, 1]} : vector<8x128xf32> to vector<8x32xf32>
    %48 = vector.extract_strided_slice %45 {offsets = [0, 0], sizes = [8, 32], strides = [1, 1]} : vector<8x128xf32> to vector<8x32xf32>
    %49 = arith.addf %47, %48 : vector<8x32xf32>
    %50 = arith.negf %49 : vector<8x32xf32>
    %51 = math.exp %50 : vector<8x32xf32>
    %cst_19 = arith.constant 1.000000e+00 : f32
    %52 = vector.broadcast %cst_19 : f32 to vector<8x32xf32>
    %53 = arith.addf %52, %51 : vector<8x32xf32>
    %54 = arith.divf %52, %53 : vector<8x32xf32>
    %55 = vector.extract_strided_slice %46 {offsets = [0, 32], sizes = [8, 32], strides = [1, 1]} : vector<8x128xf32> to vector<8x32xf32>
    %56 = vector.extract_strided_slice %45 {offsets = [0, 32], sizes = [8, 32], strides = [1, 1]} : vector<8x128xf32> to vector<8x32xf32>
    %57 = arith.addf %55, %56 : vector<8x32xf32>
    %58 = arith.negf %57 : vector<8x32xf32>
    %59 = math.exp %58 : vector<8x32xf32>
    %cst_20 = arith.constant 1.000000e+00 : f32
    %60 = vector.broadcast %cst_20 : f32 to vector<8x32xf32>
    %61 = arith.addf %60, %59 : vector<8x32xf32>
    %62 = arith.divf %60, %61 : vector<8x32xf32>
    %63 = vector.extract_strided_slice %46 {offsets = [0, 64], sizes = [8, 32], strides = [1, 1]} : vector<8x128xf32> to vector<8x32xf32>
    %64 = vector.extract_strided_slice %45 {offsets = [0, 64], sizes = [8, 32], strides = [1, 1]} : vector<8x128xf32> to vector<8x32xf32>
    %65 = arith.mulf %54, %64 : vector<8x32xf32>
    %66 = arith.addf %63, %65 : vector<8x32xf32>
    %67 = math.tanh %66 : vector<8x32xf32>
    %cst_21 = arith.constant 1.000000e+00 : f32
    %68 = vector.broadcast %cst_21 : f32 to vector<8x32xf32>
    %69 = arith.subf %68, %62 : vector<8x32xf32>
    %70 = arith.mulf %69, %67 : vector<8x32xf32>
    %71 = arith.mulf %62, %43 : vector<8x32xf32>
    %72 = arith.addf %70, %71 : vector<8x32xf32>
    %cst_22 = arith.constant dense<0.000000e+00> : vector<8x128xf32>
    %73 = tpu.matmul %72, %0, %cst_22 {dimension_numbers = #tpu.dot_dimension_numbers<[1], [0], [0], [1], [0, 0, 1, 1], [], []>} : vector<8x32xf32>, vector<32x128xf32>, vector<8x128xf32> -> vector<8x128xf32>
    %74 = arith.addf %73, %4 : vector<8x128xf32>
    %75 = vector.extract_strided_slice %13 {offsets = [16, 0], sizes = [8, 128], strides = [1, 1]} : vector<64x128xf32> to vector<8x128xf32>
    %76 = vector.extract_strided_slice %75 {offsets = [0, 0], sizes = [8, 32], strides = [1, 1]} : vector<8x128xf32> to vector<8x32xf32>
    %77 = vector.extract_strided_slice %74 {offsets = [0, 0], sizes = [8, 32], strides = [1, 1]} : vector<8x128xf32> to vector<8x32xf32>
    %78 = arith.addf %76, %77 : vector<8x32xf32>
    %79 = arith.negf %78 : vector<8x32xf32>
    %80 = math.exp %79 : vector<8x32xf32>
    %cst_23 = arith.constant 1.000000e+00 : f32
    %81 = vector.broadcast %cst_23 : f32 to vector<8x32xf32>
    %82 = arith.addf %81, %80 : vector<8x32xf32>
    %83 = arith.divf %81, %82 : vector<8x32xf32>
    %84 = vector.extract_strided_slice %75 {offsets = [0, 32], sizes = [8, 32], strides = [1, 1]} : vector<8x128xf32> to vector<8x32xf32>
    %85 = vector.extract_strided_slice %74 {offsets = [0, 32], sizes = [8, 32], strides = [1, 1]} : vector<8x128xf32> to vector<8x32xf32>
    %86 = arith.addf %84, %85 : vector<8x32xf32>
    %87 = arith.negf %86 : vector<8x32xf32>
    %88 = math.exp %87 : vector<8x32xf32>
    %cst_24 = arith.constant 1.000000e+00 : f32
    %89 = vector.broadcast %cst_24 : f32 to vector<8x32xf32>
    %90 = arith.addf %89, %88 : vector<8x32xf32>
    %91 = arith.divf %89, %90 : vector<8x32xf32>
    %92 = vector.extract_strided_slice %75 {offsets = [0, 64], sizes = [8, 32], strides = [1, 1]} : vector<8x128xf32> to vector<8x32xf32>
    %93 = vector.extract_strided_slice %74 {offsets = [0, 64], sizes = [8, 32], strides = [1, 1]} : vector<8x128xf32> to vector<8x32xf32>
    %94 = arith.mulf %83, %93 : vector<8x32xf32>
    %95 = arith.addf %92, %94 : vector<8x32xf32>
    %96 = math.tanh %95 : vector<8x32xf32>
    %cst_25 = arith.constant 1.000000e+00 : f32
    %97 = vector.broadcast %cst_25 : f32 to vector<8x32xf32>
    %98 = arith.subf %97, %91 : vector<8x32xf32>
    %99 = arith.mulf %98, %96 : vector<8x32xf32>
    %100 = arith.mulf %91, %72 : vector<8x32xf32>
    %101 = arith.addf %99, %100 : vector<8x32xf32>
    %cst_26 = arith.constant dense<0.000000e+00> : vector<8x128xf32>
    %102 = tpu.matmul %101, %0, %cst_26 {dimension_numbers = #tpu.dot_dimension_numbers<[1], [0], [0], [1], [0, 0, 1, 1], [], []>} : vector<8x32xf32>, vector<32x128xf32>, vector<8x128xf32> -> vector<8x128xf32>
    %103 = arith.addf %102, %4 : vector<8x128xf32>
    %104 = vector.extract_strided_slice %13 {offsets = [24, 0], sizes = [8, 128], strides = [1, 1]} : vector<64x128xf32> to vector<8x128xf32>
    %105 = vector.extract_strided_slice %104 {offsets = [0, 0], sizes = [8, 32], strides = [1, 1]} : vector<8x128xf32> to vector<8x32xf32>
    %106 = vector.extract_strided_slice %103 {offsets = [0, 0], sizes = [8, 32], strides = [1, 1]} : vector<8x128xf32> to vector<8x32xf32>
    %107 = arith.addf %105, %106 : vector<8x32xf32>
    %108 = arith.negf %107 : vector<8x32xf32>
    %109 = math.exp %108 : vector<8x32xf32>
    %cst_27 = arith.constant 1.000000e+00 : f32
    %110 = vector.broadcast %cst_27 : f32 to vector<8x32xf32>
    %111 = arith.addf %110, %109 : vector<8x32xf32>
    %112 = arith.divf %110, %111 : vector<8x32xf32>
    %113 = vector.extract_strided_slice %104 {offsets = [0, 32], sizes = [8, 32], strides = [1, 1]} : vector<8x128xf32> to vector<8x32xf32>
    %114 = vector.extract_strided_slice %103 {offsets = [0, 32], sizes = [8, 32], strides = [1, 1]} : vector<8x128xf32> to vector<8x32xf32>
    %115 = arith.addf %113, %114 : vector<8x32xf32>
    %116 = arith.negf %115 : vector<8x32xf32>
    %117 = math.exp %116 : vector<8x32xf32>
    %cst_28 = arith.constant 1.000000e+00 : f32
    %118 = vector.broadcast %cst_28 : f32 to vector<8x32xf32>
    %119 = arith.addf %118, %117 : vector<8x32xf32>
    %120 = arith.divf %118, %119 : vector<8x32xf32>
    %121 = vector.extract_strided_slice %104 {offsets = [0, 64], sizes = [8, 32], strides = [1, 1]} : vector<8x128xf32> to vector<8x32xf32>
    %122 = vector.extract_strided_slice %103 {offsets = [0, 64], sizes = [8, 32], strides = [1, 1]} : vector<8x128xf32> to vector<8x32xf32>
    %123 = arith.mulf %112, %122 : vector<8x32xf32>
    %124 = arith.addf %121, %123 : vector<8x32xf32>
    %125 = math.tanh %124 : vector<8x32xf32>
    %cst_29 = arith.constant 1.000000e+00 : f32
    %126 = vector.broadcast %cst_29 : f32 to vector<8x32xf32>
    %127 = arith.subf %126, %120 : vector<8x32xf32>
    %128 = arith.mulf %127, %125 : vector<8x32xf32>
    %129 = arith.mulf %120, %101 : vector<8x32xf32>
    %130 = arith.addf %128, %129 : vector<8x32xf32>
    %cst_30 = arith.constant dense<0.000000e+00> : vector<8x128xf32>
    %131 = tpu.matmul %130, %0, %cst_30 {dimension_numbers = #tpu.dot_dimension_numbers<[1], [0], [0], [1], [0, 0, 1, 1], [], []>} : vector<8x32xf32>, vector<32x128xf32>, vector<8x128xf32> -> vector<8x128xf32>
    %132 = arith.addf %131, %4 : vector<8x128xf32>
    %133 = vector.extract_strided_slice %13 {offsets = [32, 0], sizes = [8, 128], strides = [1, 1]} : vector<64x128xf32> to vector<8x128xf32>
    %134 = vector.extract_strided_slice %133 {offsets = [0, 0], sizes = [8, 32], strides = [1, 1]} : vector<8x128xf32> to vector<8x32xf32>
    %135 = vector.extract_strided_slice %132 {offsets = [0, 0], sizes = [8, 32], strides = [1, 1]} : vector<8x128xf32> to vector<8x32xf32>
    %136 = arith.addf %134, %135 : vector<8x32xf32>
    %137 = arith.negf %136 : vector<8x32xf32>
    %138 = math.exp %137 : vector<8x32xf32>
    %cst_31 = arith.constant 1.000000e+00 : f32
    %139 = vector.broadcast %cst_31 : f32 to vector<8x32xf32>
    %140 = arith.addf %139, %138 : vector<8x32xf32>
    %141 = arith.divf %139, %140 : vector<8x32xf32>
    %142 = vector.extract_strided_slice %133 {offsets = [0, 32], sizes = [8, 32], strides = [1, 1]} : vector<8x128xf32> to vector<8x32xf32>
    %143 = vector.extract_strided_slice %132 {offsets = [0, 32], sizes = [8, 32], strides = [1, 1]} : vector<8x128xf32> to vector<8x32xf32>
    %144 = arith.addf %142, %143 : vector<8x32xf32>
    %145 = arith.negf %144 : vector<8x32xf32>
    %146 = math.exp %145 : vector<8x32xf32>
    %cst_32 = arith.constant 1.000000e+00 : f32
    %147 = vector.broadcast %cst_32 : f32 to vector<8x32xf32>
    %148 = arith.addf %147, %146 : vector<8x32xf32>
    %149 = arith.divf %147, %148 : vector<8x32xf32>
    %150 = vector.extract_strided_slice %133 {offsets = [0, 64], sizes = [8, 32], strides = [1, 1]} : vector<8x128xf32> to vector<8x32xf32>
    %151 = vector.extract_strided_slice %132 {offsets = [0, 64], sizes = [8, 32], strides = [1, 1]} : vector<8x128xf32> to vector<8x32xf32>
    %152 = arith.mulf %141, %151 : vector<8x32xf32>
    %153 = arith.addf %150, %152 : vector<8x32xf32>
    %154 = math.tanh %153 : vector<8x32xf32>
    %cst_33 = arith.constant 1.000000e+00 : f32
    %155 = vector.broadcast %cst_33 : f32 to vector<8x32xf32>
    %156 = arith.subf %155, %149 : vector<8x32xf32>
    %157 = arith.mulf %156, %154 : vector<8x32xf32>
    %158 = arith.mulf %149, %130 : vector<8x32xf32>
    %159 = arith.addf %157, %158 : vector<8x32xf32>
    %cst_34 = arith.constant dense<0.000000e+00> : vector<8x128xf32>
    %160 = tpu.matmul %159, %0, %cst_34 {dimension_numbers = #tpu.dot_dimension_numbers<[1], [0], [0], [1], [0, 0, 1, 1], [], []>} : vector<8x32xf32>, vector<32x128xf32>, vector<8x128xf32> -> vector<8x128xf32>
    %161 = arith.addf %160, %4 : vector<8x128xf32>
    %162 = vector.extract_strided_slice %13 {offsets = [40, 0], sizes = [8, 128], strides = [1, 1]} : vector<64x128xf32> to vector<8x128xf32>
    %163 = vector.extract_strided_slice %162 {offsets = [0, 0], sizes = [8, 32], strides = [1, 1]} : vector<8x128xf32> to vector<8x32xf32>
    %164 = vector.extract_strided_slice %161 {offsets = [0, 0], sizes = [8, 32], strides = [1, 1]} : vector<8x128xf32> to vector<8x32xf32>
    %165 = arith.addf %163, %164 : vector<8x32xf32>
    %166 = arith.negf %165 : vector<8x32xf32>
    %167 = math.exp %166 : vector<8x32xf32>
    %cst_35 = arith.constant 1.000000e+00 : f32
    %168 = vector.broadcast %cst_35 : f32 to vector<8x32xf32>
    %169 = arith.addf %168, %167 : vector<8x32xf32>
    %170 = arith.divf %168, %169 : vector<8x32xf32>
    %171 = vector.extract_strided_slice %162 {offsets = [0, 32], sizes = [8, 32], strides = [1, 1]} : vector<8x128xf32> to vector<8x32xf32>
    %172 = vector.extract_strided_slice %161 {offsets = [0, 32], sizes = [8, 32], strides = [1, 1]} : vector<8x128xf32> to vector<8x32xf32>
    %173 = arith.addf %171, %172 : vector<8x32xf32>
    %174 = arith.negf %173 : vector<8x32xf32>
    %175 = math.exp %174 : vector<8x32xf32>
    %cst_36 = arith.constant 1.000000e+00 : f32
    %176 = vector.broadcast %cst_36 : f32 to vector<8x32xf32>
    %177 = arith.addf %176, %175 : vector<8x32xf32>
    %178 = arith.divf %176, %177 : vector<8x32xf32>
    %179 = vector.extract_strided_slice %162 {offsets = [0, 64], sizes = [8, 32], strides = [1, 1]} : vector<8x128xf32> to vector<8x32xf32>
    %180 = vector.extract_strided_slice %161 {offsets = [0, 64], sizes = [8, 32], strides = [1, 1]} : vector<8x128xf32> to vector<8x32xf32>
    %181 = arith.mulf %170, %180 : vector<8x32xf32>
    %182 = arith.addf %179, %181 : vector<8x32xf32>
    %183 = math.tanh %182 : vector<8x32xf32>
    %cst_37 = arith.constant 1.000000e+00 : f32
    %184 = vector.broadcast %cst_37 : f32 to vector<8x32xf32>
    %185 = arith.subf %184, %178 : vector<8x32xf32>
    %186 = arith.mulf %185, %183 : vector<8x32xf32>
    %187 = arith.mulf %178, %159 : vector<8x32xf32>
    %188 = arith.addf %186, %187 : vector<8x32xf32>
    %cst_38 = arith.constant dense<0.000000e+00> : vector<8x128xf32>
    %189 = tpu.matmul %188, %0, %cst_38 {dimension_numbers = #tpu.dot_dimension_numbers<[1], [0], [0], [1], [0, 0, 1, 1], [], []>} : vector<8x32xf32>, vector<32x128xf32>, vector<8x128xf32> -> vector<8x128xf32>
    %190 = arith.addf %189, %4 : vector<8x128xf32>
    %191 = vector.extract_strided_slice %13 {offsets = [48, 0], sizes = [8, 128], strides = [1, 1]} : vector<64x128xf32> to vector<8x128xf32>
    %192 = vector.extract_strided_slice %191 {offsets = [0, 0], sizes = [8, 32], strides = [1, 1]} : vector<8x128xf32> to vector<8x32xf32>
    %193 = vector.extract_strided_slice %190 {offsets = [0, 0], sizes = [8, 32], strides = [1, 1]} : vector<8x128xf32> to vector<8x32xf32>
    %194 = arith.addf %192, %193 : vector<8x32xf32>
    %195 = arith.negf %194 : vector<8x32xf32>
    %196 = math.exp %195 : vector<8x32xf32>
    %cst_39 = arith.constant 1.000000e+00 : f32
    %197 = vector.broadcast %cst_39 : f32 to vector<8x32xf32>
    %198 = arith.addf %197, %196 : vector<8x32xf32>
    %199 = arith.divf %197, %198 : vector<8x32xf32>
    %200 = vector.extract_strided_slice %191 {offsets = [0, 32], sizes = [8, 32], strides = [1, 1]} : vector<8x128xf32> to vector<8x32xf32>
    %201 = vector.extract_strided_slice %190 {offsets = [0, 32], sizes = [8, 32], strides = [1, 1]} : vector<8x128xf32> to vector<8x32xf32>
    %202 = arith.addf %200, %201 : vector<8x32xf32>
    %203 = arith.negf %202 : vector<8x32xf32>
    %204 = math.exp %203 : vector<8x32xf32>
    %cst_40 = arith.constant 1.000000e+00 : f32
    %205 = vector.broadcast %cst_40 : f32 to vector<8x32xf32>
    %206 = arith.addf %205, %204 : vector<8x32xf32>
    %207 = arith.divf %205, %206 : vector<8x32xf32>
    %208 = vector.extract_strided_slice %191 {offsets = [0, 64], sizes = [8, 32], strides = [1, 1]} : vector<8x128xf32> to vector<8x32xf32>
    %209 = vector.extract_strided_slice %190 {offsets = [0, 64], sizes = [8, 32], strides = [1, 1]} : vector<8x128xf32> to vector<8x32xf32>
    %210 = arith.mulf %199, %209 : vector<8x32xf32>
    %211 = arith.addf %208, %210 : vector<8x32xf32>
    %212 = math.tanh %211 : vector<8x32xf32>
    %cst_41 = arith.constant 1.000000e+00 : f32
    %213 = vector.broadcast %cst_41 : f32 to vector<8x32xf32>
    %214 = arith.subf %213, %207 : vector<8x32xf32>
    %215 = arith.mulf %214, %212 : vector<8x32xf32>
    %216 = arith.mulf %207, %188 : vector<8x32xf32>
    %217 = arith.addf %215, %216 : vector<8x32xf32>
    %cst_42 = arith.constant dense<0.000000e+00> : vector<8x128xf32>
    %218 = tpu.matmul %217, %0, %cst_42 {dimension_numbers = #tpu.dot_dimension_numbers<[1], [0], [0], [1], [0, 0, 1, 1], [], []>} : vector<8x32xf32>, vector<32x128xf32>, vector<8x128xf32> -> vector<8x128xf32>
    %219 = arith.addf %218, %4 : vector<8x128xf32>
    %220 = vector.extract_strided_slice %13 {offsets = [56, 0], sizes = [8, 128], strides = [1, 1]} : vector<64x128xf32> to vector<8x128xf32>
    %221 = vector.extract_strided_slice %220 {offsets = [0, 0], sizes = [8, 32], strides = [1, 1]} : vector<8x128xf32> to vector<8x32xf32>
    %222 = vector.extract_strided_slice %219 {offsets = [0, 0], sizes = [8, 32], strides = [1, 1]} : vector<8x128xf32> to vector<8x32xf32>
    %223 = arith.addf %221, %222 : vector<8x32xf32>
    %224 = arith.negf %223 : vector<8x32xf32>
    %225 = math.exp %224 : vector<8x32xf32>
    %cst_43 = arith.constant 1.000000e+00 : f32
    %226 = vector.broadcast %cst_43 : f32 to vector<8x32xf32>
    %227 = arith.addf %226, %225 : vector<8x32xf32>
    %228 = arith.divf %226, %227 : vector<8x32xf32>
    %229 = vector.extract_strided_slice %220 {offsets = [0, 32], sizes = [8, 32], strides = [1, 1]} : vector<8x128xf32> to vector<8x32xf32>
    %230 = vector.extract_strided_slice %219 {offsets = [0, 32], sizes = [8, 32], strides = [1, 1]} : vector<8x128xf32> to vector<8x32xf32>
    %231 = arith.addf %229, %230 : vector<8x32xf32>
    %232 = arith.negf %231 : vector<8x32xf32>
    %233 = math.exp %232 : vector<8x32xf32>
    %cst_44 = arith.constant 1.000000e+00 : f32
    %234 = vector.broadcast %cst_44 : f32 to vector<8x32xf32>
    %235 = arith.addf %234, %233 : vector<8x32xf32>
    %236 = arith.divf %234, %235 : vector<8x32xf32>
    %237 = vector.extract_strided_slice %220 {offsets = [0, 64], sizes = [8, 32], strides = [1, 1]} : vector<8x128xf32> to vector<8x32xf32>
    %238 = vector.extract_strided_slice %219 {offsets = [0, 64], sizes = [8, 32], strides = [1, 1]} : vector<8x128xf32> to vector<8x32xf32>
    %239 = arith.mulf %228, %238 : vector<8x32xf32>
    %240 = arith.addf %237, %239 : vector<8x32xf32>
    %241 = math.tanh %240 : vector<8x32xf32>
    %cst_45 = arith.constant 1.000000e+00 : f32
    %242 = vector.broadcast %cst_45 : f32 to vector<8x32xf32>
    %243 = arith.subf %242, %236 : vector<8x32xf32>
    %244 = arith.mulf %243, %241 : vector<8x32xf32>
    %245 = arith.mulf %236, %217 : vector<8x32xf32>
    %246 = arith.addf %244, %245 : vector<8x32xf32>
    %cst_46 = arith.constant dense<0.000000e+00> : vector<8x256xf32>
    %247 = tpu.matmul %246, %1, %cst_46 {dimension_numbers = #tpu.dot_dimension_numbers<[1], [0], [0], [1], [0, 0, 1, 1], [], []>} : vector<8x32xf32>, vector<32x256xf32>, vector<8x256xf32> -> vector<8x256xf32>
    %248 = arith.addf %247, %7 : vector<8x256xf32>
    %249 = vector.extract_strided_slice %248 {offsets = [0, 0], sizes = [8, 96], strides = [1, 1]} : vector<8x256xf32> to vector<8x96xf32>
    %250 = vector.extract_strided_slice %248 {offsets = [0, 128], sizes = [8, 96], strides = [1, 1]} : vector<8x256xf32> to vector<8x96xf32>
    %251 = vector.extract_strided_slice %249 {offsets = [0, 0], sizes = [8, 32], strides = [1, 1]} : vector<8x96xf32> to vector<8x32xf32>
    %252 = vector.extract_strided_slice %250 {offsets = [0, 0], sizes = [8, 32], strides = [1, 1]} : vector<8x96xf32> to vector<8x32xf32>
    %253 = arith.addf %251, %252 : vector<8x32xf32>
    %254 = arith.negf %253 : vector<8x32xf32>
    %255 = math.exp %254 : vector<8x32xf32>
    %cst_47 = arith.constant 1.000000e+00 : f32
    %256 = vector.broadcast %cst_47 : f32 to vector<8x32xf32>
    %257 = arith.addf %256, %255 : vector<8x32xf32>
    %258 = arith.divf %256, %257 : vector<8x32xf32>
    %259 = vector.extract_strided_slice %249 {offsets = [0, 32], sizes = [8, 32], strides = [1, 1]} : vector<8x96xf32> to vector<8x32xf32>
    %260 = vector.extract_strided_slice %250 {offsets = [0, 32], sizes = [8, 32], strides = [1, 1]} : vector<8x96xf32> to vector<8x32xf32>
    %261 = arith.addf %259, %260 : vector<8x32xf32>
    %262 = arith.negf %261 : vector<8x32xf32>
    %263 = math.exp %262 : vector<8x32xf32>
    %cst_48 = arith.constant 1.000000e+00 : f32
    %264 = vector.broadcast %cst_48 : f32 to vector<8x32xf32>
    %265 = arith.addf %264, %263 : vector<8x32xf32>
    %266 = arith.divf %264, %265 : vector<8x32xf32>
    %267 = vector.extract_strided_slice %249 {offsets = [0, 64], sizes = [8, 32], strides = [1, 1]} : vector<8x96xf32> to vector<8x32xf32>
    %268 = vector.extract_strided_slice %250 {offsets = [0, 64], sizes = [8, 32], strides = [1, 1]} : vector<8x96xf32> to vector<8x32xf32>
    %269 = arith.mulf %258, %268 : vector<8x32xf32>
    %270 = arith.addf %267, %269 : vector<8x32xf32>
    %271 = math.tanh %270 : vector<8x32xf32>
    %cst_49 = arith.constant 1.000000e+00 : f32
    %272 = vector.broadcast %cst_49 : f32 to vector<8x32xf32>
    %273 = arith.subf %272, %266 : vector<8x32xf32>
    %274 = arith.mulf %273, %271 : vector<8x32xf32>
    %275 = arith.mulf %266, %246 : vector<8x32xf32>
    %276 = arith.addf %274, %275 : vector<8x32xf32>
    %cst_50 = arith.constant dense<0.000000e+00> : vector<8x256xf32>
    %277 = tpu.matmul %276, %1, %cst_50 {dimension_numbers = #tpu.dot_dimension_numbers<[1], [0], [0], [1], [0, 0, 1, 1], [], []>} : vector<8x32xf32>, vector<32x256xf32>, vector<8x256xf32> -> vector<8x256xf32>
    %278 = arith.addf %277, %7 : vector<8x256xf32>
    %279 = vector.extract_strided_slice %278 {offsets = [0, 0], sizes = [8, 128], strides = [1, 1]} : vector<8x256xf32> to vector<8x128xf32>
    %280 = vector.extract_strided_slice %278 {offsets = [0, 0], sizes = [8, 96], strides = [1, 1]} : vector<8x256xf32> to vector<8x96xf32>
    %281 = vector.extract_strided_slice %278 {offsets = [0, 128], sizes = [8, 96], strides = [1, 1]} : vector<8x256xf32> to vector<8x96xf32>
    %282 = vector.extract_strided_slice %280 {offsets = [0, 0], sizes = [8, 32], strides = [1, 1]} : vector<8x96xf32> to vector<8x32xf32>
    %283 = vector.extract_strided_slice %281 {offsets = [0, 0], sizes = [8, 32], strides = [1, 1]} : vector<8x96xf32> to vector<8x32xf32>
    %284 = arith.addf %282, %283 : vector<8x32xf32>
    %285 = arith.negf %284 : vector<8x32xf32>
    %286 = math.exp %285 : vector<8x32xf32>
    %cst_51 = arith.constant 1.000000e+00 : f32
    %287 = vector.broadcast %cst_51 : f32 to vector<8x32xf32>
    %288 = arith.addf %287, %286 : vector<8x32xf32>
    %289 = arith.divf %287, %288 : vector<8x32xf32>
    %290 = vector.extract_strided_slice %280 {offsets = [0, 32], sizes = [8, 32], strides = [1, 1]} : vector<8x96xf32> to vector<8x32xf32>
    %291 = vector.extract_strided_slice %281 {offsets = [0, 32], sizes = [8, 32], strides = [1, 1]} : vector<8x96xf32> to vector<8x32xf32>
    %292 = arith.addf %290, %291 : vector<8x32xf32>
    %293 = arith.negf %292 : vector<8x32xf32>
    %294 = math.exp %293 : vector<8x32xf32>
    %cst_52 = arith.constant 1.000000e+00 : f32
    %295 = vector.broadcast %cst_52 : f32 to vector<8x32xf32>
    %296 = arith.addf %295, %294 : vector<8x32xf32>
    %297 = arith.divf %295, %296 : vector<8x32xf32>
    %298 = vector.extract_strided_slice %280 {offsets = [0, 64], sizes = [8, 32], strides = [1, 1]} : vector<8x96xf32> to vector<8x32xf32>
    %299 = vector.extract_strided_slice %281 {offsets = [0, 64], sizes = [8, 32], strides = [1, 1]} : vector<8x96xf32> to vector<8x32xf32>
    %300 = arith.mulf %289, %299 : vector<8x32xf32>
    %301 = arith.addf %298, %300 : vector<8x32xf32>
    %302 = math.tanh %301 : vector<8x32xf32>
    %cst_53 = arith.constant 1.000000e+00 : f32
    %303 = vector.broadcast %cst_53 : f32 to vector<8x32xf32>
    %304 = arith.subf %303, %297 : vector<8x32xf32>
    %305 = arith.mulf %304, %302 : vector<8x32xf32>
    %306 = arith.mulf %297, %276 : vector<8x32xf32>
    %307 = arith.addf %305, %306 : vector<8x32xf32>
    %cst_54 = arith.constant dense<0.000000e+00> : vector<8x256xf32>
    %308 = tpu.matmul %307, %1, %cst_54 {dimension_numbers = #tpu.dot_dimension_numbers<[1], [0], [0], [1], [0, 0, 1, 1], [], []>} : vector<8x32xf32>, vector<32x256xf32>, vector<8x256xf32> -> vector<8x256xf32>
    %309 = arith.addf %308, %7 : vector<8x256xf32>
    %310 = vector.extract_strided_slice %309 {offsets = [0, 0], sizes = [8, 128], strides = [1, 1]} : vector<8x256xf32> to vector<8x128xf32>
    %311 = vector.extract_strided_slice %309 {offsets = [0, 0], sizes = [8, 96], strides = [1, 1]} : vector<8x256xf32> to vector<8x96xf32>
    %312 = vector.extract_strided_slice %309 {offsets = [0, 128], sizes = [8, 96], strides = [1, 1]} : vector<8x256xf32> to vector<8x96xf32>
    %313 = vector.extract_strided_slice %311 {offsets = [0, 0], sizes = [8, 32], strides = [1, 1]} : vector<8x96xf32> to vector<8x32xf32>
    %314 = vector.extract_strided_slice %312 {offsets = [0, 0], sizes = [8, 32], strides = [1, 1]} : vector<8x96xf32> to vector<8x32xf32>
    %315 = arith.addf %313, %314 : vector<8x32xf32>
    %316 = arith.negf %315 : vector<8x32xf32>
    %317 = math.exp %316 : vector<8x32xf32>
    %cst_55 = arith.constant 1.000000e+00 : f32
    %318 = vector.broadcast %cst_55 : f32 to vector<8x32xf32>
    %319 = arith.addf %318, %317 : vector<8x32xf32>
    %320 = arith.divf %318, %319 : vector<8x32xf32>
    %321 = vector.extract_strided_slice %311 {offsets = [0, 32], sizes = [8, 32], strides = [1, 1]} : vector<8x96xf32> to vector<8x32xf32>
    %322 = vector.extract_strided_slice %312 {offsets = [0, 32], sizes = [8, 32], strides = [1, 1]} : vector<8x96xf32> to vector<8x32xf32>
    %323 = arith.addf %321, %322 : vector<8x32xf32>
    %324 = arith.negf %323 : vector<8x32xf32>
    %325 = math.exp %324 : vector<8x32xf32>
    %cst_56 = arith.constant 1.000000e+00 : f32
    %326 = vector.broadcast %cst_56 : f32 to vector<8x32xf32>
    %327 = arith.addf %326, %325 : vector<8x32xf32>
    %328 = arith.divf %326, %327 : vector<8x32xf32>
    %329 = vector.extract_strided_slice %311 {offsets = [0, 64], sizes = [8, 32], strides = [1, 1]} : vector<8x96xf32> to vector<8x32xf32>
    %330 = vector.extract_strided_slice %312 {offsets = [0, 64], sizes = [8, 32], strides = [1, 1]} : vector<8x96xf32> to vector<8x32xf32>
    %331 = arith.mulf %320, %330 : vector<8x32xf32>
    %332 = arith.addf %329, %331 : vector<8x32xf32>
    %333 = math.tanh %332 : vector<8x32xf32>
    %cst_57 = arith.constant 1.000000e+00 : f32
    %334 = vector.broadcast %cst_57 : f32 to vector<8x32xf32>
    %335 = arith.subf %334, %328 : vector<8x32xf32>
    %336 = arith.mulf %335, %333 : vector<8x32xf32>
    %337 = arith.mulf %328, %307 : vector<8x32xf32>
    %338 = arith.addf %336, %337 : vector<8x32xf32>
    %cst_58 = arith.constant dense<0.000000e+00> : vector<8x256xf32>
    %339 = tpu.matmul %338, %1, %cst_58 {dimension_numbers = #tpu.dot_dimension_numbers<[1], [0], [0], [1], [0, 0, 1, 1], [], []>} : vector<8x32xf32>, vector<32x256xf32>, vector<8x256xf32> -> vector<8x256xf32>
    %340 = arith.addf %339, %7 : vector<8x256xf32>
    %341 = vector.extract_strided_slice %340 {offsets = [0, 0], sizes = [8, 128], strides = [1, 1]} : vector<8x256xf32> to vector<8x128xf32>
    %342 = vector.extract_strided_slice %340 {offsets = [0, 0], sizes = [8, 96], strides = [1, 1]} : vector<8x256xf32> to vector<8x96xf32>
    %343 = vector.extract_strided_slice %340 {offsets = [0, 128], sizes = [8, 96], strides = [1, 1]} : vector<8x256xf32> to vector<8x96xf32>
    %344 = vector.extract_strided_slice %342 {offsets = [0, 0], sizes = [8, 32], strides = [1, 1]} : vector<8x96xf32> to vector<8x32xf32>
    %345 = vector.extract_strided_slice %343 {offsets = [0, 0], sizes = [8, 32], strides = [1, 1]} : vector<8x96xf32> to vector<8x32xf32>
    %346 = arith.addf %344, %345 : vector<8x32xf32>
    %347 = arith.negf %346 : vector<8x32xf32>
    %348 = math.exp %347 : vector<8x32xf32>
    %cst_59 = arith.constant 1.000000e+00 : f32
    %349 = vector.broadcast %cst_59 : f32 to vector<8x32xf32>
    %350 = arith.addf %349, %348 : vector<8x32xf32>
    %351 = arith.divf %349, %350 : vector<8x32xf32>
    %352 = vector.extract_strided_slice %342 {offsets = [0, 32], sizes = [8, 32], strides = [1, 1]} : vector<8x96xf32> to vector<8x32xf32>
    %353 = vector.extract_strided_slice %343 {offsets = [0, 32], sizes = [8, 32], strides = [1, 1]} : vector<8x96xf32> to vector<8x32xf32>
    %354 = arith.addf %352, %353 : vector<8x32xf32>
    %355 = arith.negf %354 : vector<8x32xf32>
    %356 = math.exp %355 : vector<8x32xf32>
    %cst_60 = arith.constant 1.000000e+00 : f32
    %357 = vector.broadcast %cst_60 : f32 to vector<8x32xf32>
    %358 = arith.addf %357, %356 : vector<8x32xf32>
    %359 = arith.divf %357, %358 : vector<8x32xf32>
    %360 = vector.extract_strided_slice %342 {offsets = [0, 64], sizes = [8, 32], strides = [1, 1]} : vector<8x96xf32> to vector<8x32xf32>
    %361 = vector.extract_strided_slice %343 {offsets = [0, 64], sizes = [8, 32], strides = [1, 1]} : vector<8x96xf32> to vector<8x32xf32>
    %362 = arith.mulf %351, %361 : vector<8x32xf32>
    %363 = arith.addf %360, %362 : vector<8x32xf32>
    %364 = math.tanh %363 : vector<8x32xf32>
    %cst_61 = arith.constant 1.000000e+00 : f32
    %365 = vector.broadcast %cst_61 : f32 to vector<8x32xf32>
    %366 = arith.subf %365, %359 : vector<8x32xf32>
    %367 = arith.mulf %366, %364 : vector<8x32xf32>
    %368 = arith.mulf %359, %338 : vector<8x32xf32>
    %369 = arith.addf %367, %368 : vector<8x32xf32>
    %cst_62 = arith.constant dense<0.000000e+00> : vector<8x256xf32>
    %370 = tpu.matmul %369, %1, %cst_62 {dimension_numbers = #tpu.dot_dimension_numbers<[1], [0], [0], [1], [0, 0, 1, 1], [], []>} : vector<8x32xf32>, vector<32x256xf32>, vector<8x256xf32> -> vector<8x256xf32>
    %371 = arith.addf %370, %7 : vector<8x256xf32>
    %372 = vector.extract_strided_slice %371 {offsets = [0, 0], sizes = [8, 128], strides = [1, 1]} : vector<8x256xf32> to vector<8x128xf32>
    %373 = vector.extract_strided_slice %371 {offsets = [0, 0], sizes = [8, 96], strides = [1, 1]} : vector<8x256xf32> to vector<8x96xf32>
    %374 = vector.extract_strided_slice %371 {offsets = [0, 128], sizes = [8, 96], strides = [1, 1]} : vector<8x256xf32> to vector<8x96xf32>
    %375 = vector.extract_strided_slice %373 {offsets = [0, 0], sizes = [8, 32], strides = [1, 1]} : vector<8x96xf32> to vector<8x32xf32>
    %376 = vector.extract_strided_slice %374 {offsets = [0, 0], sizes = [8, 32], strides = [1, 1]} : vector<8x96xf32> to vector<8x32xf32>
    %377 = arith.addf %375, %376 : vector<8x32xf32>
    %378 = arith.negf %377 : vector<8x32xf32>
    %379 = math.exp %378 : vector<8x32xf32>
    %cst_63 = arith.constant 1.000000e+00 : f32
    %380 = vector.broadcast %cst_63 : f32 to vector<8x32xf32>
    %381 = arith.addf %380, %379 : vector<8x32xf32>
    %382 = arith.divf %380, %381 : vector<8x32xf32>
    %383 = vector.extract_strided_slice %373 {offsets = [0, 32], sizes = [8, 32], strides = [1, 1]} : vector<8x96xf32> to vector<8x32xf32>
    %384 = vector.extract_strided_slice %374 {offsets = [0, 32], sizes = [8, 32], strides = [1, 1]} : vector<8x96xf32> to vector<8x32xf32>
    %385 = arith.addf %383, %384 : vector<8x32xf32>
    %386 = arith.negf %385 : vector<8x32xf32>
    %387 = math.exp %386 : vector<8x32xf32>
    %cst_64 = arith.constant 1.000000e+00 : f32
    %388 = vector.broadcast %cst_64 : f32 to vector<8x32xf32>
    %389 = arith.addf %388, %387 : vector<8x32xf32>
    %390 = arith.divf %388, %389 : vector<8x32xf32>
    %391 = vector.extract_strided_slice %373 {offsets = [0, 64], sizes = [8, 32], strides = [1, 1]} : vector<8x96xf32> to vector<8x32xf32>
    %392 = vector.extract_strided_slice %374 {offsets = [0, 64], sizes = [8, 32], strides = [1, 1]} : vector<8x96xf32> to vector<8x32xf32>
    %393 = arith.mulf %382, %392 : vector<8x32xf32>
    %394 = arith.addf %391, %393 : vector<8x32xf32>
    %395 = math.tanh %394 : vector<8x32xf32>
    %cst_65 = arith.constant 1.000000e+00 : f32
    %396 = vector.broadcast %cst_65 : f32 to vector<8x32xf32>
    %397 = arith.subf %396, %390 : vector<8x32xf32>
    %398 = arith.mulf %397, %395 : vector<8x32xf32>
    %399 = arith.mulf %390, %369 : vector<8x32xf32>
    %400 = arith.addf %398, %399 : vector<8x32xf32>
    %cst_66 = arith.constant dense<0.000000e+00> : vector<8x256xf32>
    %401 = tpu.matmul %400, %1, %cst_66 {dimension_numbers = #tpu.dot_dimension_numbers<[1], [0], [0], [1], [0, 0, 1, 1], [], []>} : vector<8x32xf32>, vector<32x256xf32>, vector<8x256xf32> -> vector<8x256xf32>
    %402 = arith.addf %401, %7 : vector<8x256xf32>
    %403 = vector.extract_strided_slice %402 {offsets = [0, 0], sizes = [8, 128], strides = [1, 1]} : vector<8x256xf32> to vector<8x128xf32>
    %404 = vector.extract_strided_slice %402 {offsets = [0, 0], sizes = [8, 96], strides = [1, 1]} : vector<8x256xf32> to vector<8x96xf32>
    %405 = vector.extract_strided_slice %402 {offsets = [0, 128], sizes = [8, 96], strides = [1, 1]} : vector<8x256xf32> to vector<8x96xf32>
    %406 = vector.extract_strided_slice %404 {offsets = [0, 0], sizes = [8, 32], strides = [1, 1]} : vector<8x96xf32> to vector<8x32xf32>
    %407 = vector.extract_strided_slice %405 {offsets = [0, 0], sizes = [8, 32], strides = [1, 1]} : vector<8x96xf32> to vector<8x32xf32>
    %408 = arith.addf %406, %407 : vector<8x32xf32>
    %409 = arith.negf %408 : vector<8x32xf32>
    %410 = math.exp %409 : vector<8x32xf32>
    %cst_67 = arith.constant 1.000000e+00 : f32
    %411 = vector.broadcast %cst_67 : f32 to vector<8x32xf32>
    %412 = arith.addf %411, %410 : vector<8x32xf32>
    %413 = arith.divf %411, %412 : vector<8x32xf32>
    %414 = vector.extract_strided_slice %404 {offsets = [0, 32], sizes = [8, 32], strides = [1, 1]} : vector<8x96xf32> to vector<8x32xf32>
    %415 = vector.extract_strided_slice %405 {offsets = [0, 32], sizes = [8, 32], strides = [1, 1]} : vector<8x96xf32> to vector<8x32xf32>
    %416 = arith.addf %414, %415 : vector<8x32xf32>
    %417 = arith.negf %416 : vector<8x32xf32>
    %418 = math.exp %417 : vector<8x32xf32>
    %cst_68 = arith.constant 1.000000e+00 : f32
    %419 = vector.broadcast %cst_68 : f32 to vector<8x32xf32>
    %420 = arith.addf %419, %418 : vector<8x32xf32>
    %421 = arith.divf %419, %420 : vector<8x32xf32>
    %422 = vector.extract_strided_slice %404 {offsets = [0, 64], sizes = [8, 32], strides = [1, 1]} : vector<8x96xf32> to vector<8x32xf32>
    %423 = vector.extract_strided_slice %405 {offsets = [0, 64], sizes = [8, 32], strides = [1, 1]} : vector<8x96xf32> to vector<8x32xf32>
    %424 = arith.mulf %413, %423 : vector<8x32xf32>
    %425 = arith.addf %422, %424 : vector<8x32xf32>
    %426 = math.tanh %425 : vector<8x32xf32>
    %cst_69 = arith.constant 1.000000e+00 : f32
    %427 = vector.broadcast %cst_69 : f32 to vector<8x32xf32>
    %428 = arith.subf %427, %421 : vector<8x32xf32>
    %429 = arith.mulf %428, %426 : vector<8x32xf32>
    %430 = arith.mulf %421, %400 : vector<8x32xf32>
    %431 = arith.addf %429, %430 : vector<8x32xf32>
    %cst_70 = arith.constant dense<0.000000e+00> : vector<8x256xf32>
    %432 = tpu.matmul %431, %1, %cst_70 {dimension_numbers = #tpu.dot_dimension_numbers<[1], [0], [0], [1], [0, 0, 1, 1], [], []>} : vector<8x32xf32>, vector<32x256xf32>, vector<8x256xf32> -> vector<8x256xf32>
    %433 = arith.addf %432, %7 : vector<8x256xf32>
    %434 = vector.extract_strided_slice %433 {offsets = [0, 0], sizes = [8, 128], strides = [1, 1]} : vector<8x256xf32> to vector<8x128xf32>
    %435 = vector.shape_cast %279 : vector<8x128xf32> to vector<1x8x128xf32>
    %436 = vector.shape_cast %310 : vector<8x128xf32> to vector<1x8x128xf32>
    %437 = vector.shape_cast %341 : vector<8x128xf32> to vector<1x8x128xf32>
    %438 = vector.shape_cast %372 : vector<8x128xf32> to vector<1x8x128xf32>
    %439 = vector.shape_cast %403 : vector<8x128xf32> to vector<1x8x128xf32>
    %440 = vector.shape_cast %434 : vector<8x128xf32> to vector<1x8x128xf32>
    %441 = tpu.concatenate %435, %436, %437, %438, %439, %440 in 0 : vector<1x8x128xf32>, vector<1x8x128xf32>, vector<1x8x128xf32>, vector<1x8x128xf32>, vector<1x8x128xf32>, vector<1x8x128xf32> -> vector<6x8x128xf32>
    %c0_71 = arith.constant 0 : index
    %c0_72 = arith.constant 0 : index
    %c0_73 = arith.constant 0 : index
    %442 = vector.load %arg7[%c0_71, %c0_72, %c0_73] : memref<6x8x128xf32, #tpu.memory_space<vmem>>, vector<6x8x128xf32>
    tpu.vector_store %arg7[%c0_71, %c0_72, %c0_73], %441 {strides = array<i32>} : memref<6x8x128xf32, #tpu.memory_space<vmem>>, vector<6x8x128xf32>,
    return
  }
}

</mosaic_0001>

<bundles_post_ra>
// kernel: tpu_custom_call.1
= control target key start
LH: loop header
LB: loop body
LE: loop exit
PB: predicated region body
PF: predicated region fallthrough
CT: control target
= control target key end

     0   :  { %12 = vsyncpa [#allocation3], 0  ;;  %s2480_s0 = inlined_call_operand.vmem [shape: f32[64,4], index: 0, kind: input, shape index: {}]   ;;  %s2481_s1 = inlined_call_operand.vmem [shape: f32[4,128], index: 1, kind: input, shape index: {}]   ;;  %s2482_s2 = inlined_call_operand.vmem [shape: f32[1,128], index: 2, kind: input, shape index: {}]   ;;  %s2483_s3 = inlined_call_operand.hbm [shape: f32[32,128], index: 3, kind: input, shape index: {}]   ;;  %s2484_s4 = inlined_call_operand.vmem [shape: f32[1,128], index: 4, kind: input, shape index: {}]   ;;  %s2485_s5 = inlined_call_operand.vmem [shape: f32[32,256], index: 5, kind: input, shape index: {}]   ;;  %s2486_s6 = inlined_call_operand.vmem [shape: f32[1,256], index: 6, kind: input, shape index: {}]   ;;  %s2487_s7 = inlined_call_operand.hbm [shape: f32[6,8,128], index: 7, kind: output, shape index: {}]  }
   0x1   :  { %13 = vsyncpa [#allocation4], 0  ;;  %s2065_s24 = smov [#allocation2]  }
   0x2   :  { %s25_s25 = sshll.u32 %s2065_s24, 4  ;;  %s26_s25 = int_to_ptr.vmem [resolvable:$true] %s25_s25 }
   0x3   :  { %s2029_s26 = scalar_lea.vmem %s26_s25, 512  ;;  %p2034_p1 = scmp.lt.s32.totalorder %s26_s25, %s26_s25 }
   0x4   :  { %p2030_p0 = scmp.ne.s32.totalorder %s26_s25, %s2029_s26  ;;  %p2035_p2 = scmp.lt.s32.totalorder %s2029_s26, %s2029_s26 }
   0x6   :  { %p2036_p3 = por %p2035_p2, %p2034_p1 }
   0x8   :  { %p2037_p4 = pnand %p2036_p3, %p2030_p0 }
   0xa   :  { %2040 = shalt.err (!%p2037_p4)
}
   0xb   :  { %s2066_s27 = smov 128   ;;  %s2067_s28 = smov 8  }
   0xc   :  { %31 = dma.hbm_to_vmem [thread:$0]  %s2483_s3, 512, %s26_s25, [#allocation3], %s2066_s27, %s2066_s27, %s2067_s28  }
   0xd   :  { %2061 = dma.done.wait [#allocation3], 512  }
   0xe   :  { %2062 = vsyncadd [#allocation3], 4294966784  ;;  %v2068_v0 = vmov 0.0   ;;  %vm2069_vm0 = vmmov 0   ;;  %vm113_vm1 = vcmask 1043456   ;;  %v2122_v1 = vld [vmem:[#allocation2 + $0x18] sm:$0xff] }
   0xf   :  { %1841 = vmatprep.subr.mxu1 %v2068_v0  ;;  %1849 = vmatprep.mubr.msk.f32.mxu1 %vm2069_vm0, %v2068_v0  ;;  %v2124_v2 = vld [vmem:[#allocation2 + $0x10] sm:$0xff]  ;;  %v80_v3 = vld [vmem:[%s2481_s1] sm:$0xf]  ;;  %vm88_vm2 = vcmask 31744   ;;  %v73_v5 = vld [vmem:[%s2480_s0 + $0x8] sm:$0xff]  ;;  %s2070_s14 = smov 64  }
  0x10   :  { %1842 = vmatpush3.msra.mxu1 %v2122_v1  ;;  %1827 = vmatprep.subr.msk.mxu0 %vm113_vm1, %v80_v3  ;;  %v72_v4 = vld [vmem:[%s2480_s0] sm:$0xff]  ;;  %v2137_v6 = vld [vmem:[#allocation2 + $0x8] sm:$0xff]  ;;  %vm222_vm3 = vcmask 261120   ;;  %v74_v45 = vld [vmem:[%s2480_s0 + $0x10] sm:$0xff] }
  0x11   :  { %1843 = vmatprep.subr.mxu1 %v2068_v0  ;;  %1828 = vmatpush3.msk.msra.mxu0 %vm113_vm1, %v80_v3  ;;  %v2143_v7 = vld [vmem:[#allocation2] sm:$0xff]  ;;  %v75_v46 = vld [vmem:[%s2480_s0 + $0x18] sm:$0xff]  ;;  %v77_v48 = vld [vmem:[%s2480_s0 + $0x28] sm:$0xff] }
  0x12   :  { %1844 = vmatpush3.msra.mxu1 %v2124_v2  ;;  %1829 = vmatprep.mubr.msk.f32.mxu0 %vm88_vm2, %v72_v4  ;;  %v2172_v8 = vld [vmem:[%s2484_s4] ss:$0 sm:$0xff]  ;;  %v78_v49 = vld [vmem:[%s2480_s0 + $0x30] sm:$0xff]  ;;  %v79_v50 = vld [vmem:[%s2480_s0 + $0x38] sm:$0xff] }
  0x13   :  { %1845 = vmatprep.subr.mxu1 %v2068_v0  ;;  %1830 = vmatmul.mubr.msk.f32.vlgmr.msra.gmra.mxu0 %vm88_vm2, %v73_v5  ;;  %v2179_v13 = vld [vmem:[%s2482_s2] ss:$0 sm:$0xff]  ;;  %s2071_s2 = smov 96  }
  0x14   :  { %1846 = vmatpush3.msra.mxu1 %v2137_v6  ;;  %1863 = vmatprep.subr.mxu0 %v2068_v0  ;;  %v76_v47 = vld [vmem:[%s2480_s0 + $0x20] sm:$0xff] }
  0x15   :  { %1847 = vmatprep.subr.mxu1 %v2068_v0  ;;  %1864 = vmatpush3.msra.mxu0 %v2122_v1 }
  0x16   :  { %1848 = vmatpush3.msra.mxu1 %v2143_v7  ;;  %1865 = vmatprep.subr.mxu0 %v2068_v0 }
  0x17   :  { %1850 = vmatmul.mubr.f32.vlgmr.msra.gmra.mxu1 %v2068_v0  ;;  %1852 = vmatprep.subr.mxu1 %v2068_v0 }
  0x18   :  { %1853 = vmatpush3.msra.mxu1 %v2122_v1  ;;  %1860 = vmatprep.mubr.msk.f32.mxu1 %vm2069_vm0, %v2068_v0 }
  0x19   :  { %1854 = vmatprep.subr.mxu1 %v2068_v0  ;;  %1866 = vmatpush3.msra.mxu0 %v2124_v2 }
  0x1a   :  { %1855 = vmatpush3.msra.mxu1 %v2124_v2  ;;  %1867 = vmatprep.subr.mxu0 %v2068_v0 }
  0x1b   :  { %1856 = vmatprep.subr.mxu1 %v2068_v0  ;;  %1868 = vmatpush3.msra.mxu0 %v2137_v6 }
  0x1c   :  { %1857 = vmatpush3.msra.mxu1 %v2137_v6  ;;  %1869 = vmatprep.subr.mxu0 %v2068_v0 }
  0x1d   :  { %1858 = vmatprep.subr.mxu1 %v2068_v0  ;;  %1870 = vmatpush3.msra.mxu0 %v2143_v7 }
  0x1e   :  { %1859 = vmatpush3.msra.mxu1 %v2143_v7  ;;  %1885 = vmatprep.subr.mxu0 %v2068_v0 }
  0x1f   :  { %1874 = vmatprep.subr.mxu1 %v2068_v0  ;;  %1832 = vmatprep.mubr.msk.f32.mxu0 %vm88_vm2, %v74_v45 }
  0x20   :  { %1833 = vmatmul.mubr.msk.f32.gmra.mxu0 %vm88_vm2, %v75_v46 }
  0x21   :  { %1835 = vmatprep.mubr.msk.f32.mxu0 %vm88_vm2, %v76_v47 }
  0x24   :  { %1836 = vmatmul.mubr.msk.f32.gmra.mxu0 %vm88_vm2, %v77_v48 }
  0x25   :  { %1838 = vmatprep.mubr.msk.f32.mxu0 %vm88_vm2, %v78_v49 }
  0x28   :  { %1839 = vmatmul.mubr.msk.f32.gmra.mxu0 %vm88_vm2, %v79_v50 }
  0x29   :  { %1871 = vmatprep.mubr.msk.f32.mxu0 %vm2069_vm0, %v2068_v0 }
  0xd3   :  { %v1831_v12 = vpop.f32.mrf.mxu0 }
  0xd4   :  { %v189_v35 = vadd.f32 %v1831_v12, %v2179_v13 }
  0xd5   :  { %v183_v14 = vpop.f32.mrf.mxu0 }
  0xd6   :  { %v184_v15 = vadd.f32 %v2179_v13, %v183_v14 }
  0xd7   :  { %v292_v9 = vpop.f32.mrf.mxu1 }
  0xd8   :  { %v293_v10 = vadd.f32 %v2172_v8, %v292_v9 }
  0xd9   :  { %v1851_v11 = vpop.f32.mrf.mxu1 }
  0xda   :  { %304 = vrot.lane.b32.xlu0 %v293_v10, %s2070_s14  ;;  %v296_v16 = vadd.f32 %v293_v10, %v184_v15 }
  0xdc   :  { %v1750_v17 = vmul.f32 -1.442695, %v296_v16 }
  0xde   :  { %1937 = vpow2.f32 %v1750_v17 }
  0xe0   :  { %v1834_v58 = vpop.f32.mrf.mxu0 }
  0xe2   :  { %v193_v59 = vpop.f32.mrf.mxu0 }
  0xe3   :  { %v194_v9 = vadd.f32 %v2179_v13, %v193_v59 }
  0xe4   :  { %v2239_v60 = vpop.f32.mrf.mxu0 }
  0xe6   :  { %v2241_v61 = vpop.f32.mrf.mxu0 }
  0xe7   :  { %v204_v50 = vadd.f32 %v2179_v13, %v2241_v61 }
  0xe8   :  { %v2243_v62 = vpop.f32.mrf.mxu0 }
  0xea   :  { %v2245_v63 = vpop.f32.mrf.mxu0 }
  0xeb   :  { %v1938_v18 = vpop.eup %1937 }
  0xec   :  { %v300_v19 = vadd.f32 1.0, %v1938_v18 }
  0xee   :  { %1939 = vrcp.f32 %v300_v19 }
  0xfb   :  { %v1940_v20 = vpop.eup %1939 }
  0xfc   :  { %v314_v26 = vsub.f32 1.0, %v1940_v20  ;;  %v320_v28 = vmul.f32 0.0, %v1940_v20 }
 0x14c   :  { %v305_v21 = vpop.permute.xlu0 %304 }
 0x14d   :  { %v307_v22 = vmul.f32 %v1940_v20, %v305_v21 }
 0x14f   :  { %309 = vrot.lane.b32.xlu0 %v307_v22, %s2070_s14 }
 0x1c1   :  { %v310_v23 = vpop.permute.xlu0 %309 }
 0x1c2   :  { %v312_v24 = vadd.f32 %v310_v23, %v184_v15 }
 0x1c4   :  { %1941 = vtanh.f32 %v312_v24 }
 0x1d1   :  { %v1942_v25 = vpop.eup %1941 }
 0x1d2   :  { %316 = vrot.lane.b32.xlu1 %v1942_v25, %s2071_s2 }
 0x244   :  { %v317_v27 = vpop.permute.xlu1 %316 }
 0x245   :  { %v319_v29 = vmul.f32 %v317_v27, %v314_v26 }
 0x247   :  { %v321_v30 = vadd.f32 %v320_v28, %v319_v29 }
 0x249   :  { %323 = vrot.lane.b32.xlu1 %v321_v30, %s2071_s2 }
 0x2bb   :  { %v324_v31 = vpop.permute.xlu1 %323 }
 0x2bc   :  { %1861 = vmatmul.mubr.msk.f32.vlgmr.msra.gmra.mxu1 %vm222_vm3, %v324_v31 }
 0x2bd   :  { %1875 = vmatpush3.msra.mxu1 %v2122_v1  ;;  %1882 = vmatprep.mubr.msk.f32.mxu1 %vm2069_vm0, %v2068_v0 }
 0x2be   :  { %1876 = vmatprep.subr.mxu1 %v2068_v0 }
 0x2bf   :  { %1877 = vmatpush3.msra.mxu1 %v2124_v2 }
 0x2c0   :  { %1878 = vmatprep.subr.mxu1 %v2068_v0 }
 0x2c1   :  { %1879 = vmatpush3.msra.mxu1 %v2137_v6 }
 0x2c2   :  { %1880 = vmatprep.subr.mxu1 %v2068_v0 }
 0x2c3   :  { %1881 = vmatpush3.msra.mxu1 %v2143_v7 }
 0x2c4   :  { %1896 = vmatprep.subr.mxu1 %v2068_v0 }
 0x37c   :  { %v393_v32 = vpop.f32.mrf.mxu1 }
 0x37d   :  { %v394_v33 = vadd.f32 %v2172_v8, %v393_v32 }
 0x37e   :  { %v1862_v34 = vpop.f32.mrf.mxu1 }
 0x37f   :  { %405 = vrot.lane.b32.xlu0 %v394_v33, %s2070_s14  ;;  %v397_v36 = vadd.f32 %v394_v33, %v189_v35 }
 0x381   :  { %v1752_v37 = vmul.f32 -1.442695, %v397_v36 }
 0x383   :  { %1943 = vpow2.f32 %v1752_v37 }
 0x390   :  { %v1944_v38 = vpop.eup %1943 }
 0x391   :  { %v401_v39 = vadd.f32 1.0, %v1944_v38 }
 0x393   :  { %1945 = vrcp.f32 %v401_v39 }
 0x3a0   :  { %v1946_v40 = vpop.eup %1945 }
 0x3a1   :  { %v415_v52 = vsub.f32 1.0, %v1946_v40  ;;  %v421_v54 = vmul.f32 %v1946_v40, %v321_v30  ;;  %v199_v30 = vadd.f32 %v1834_v58, %v2179_v13 }
 0x3f1   :  { %v406_v41 = vpop.permute.xlu0 %405 }
 0x3f2   :  { %v408_v42 = vmul.f32 %v1946_v40, %v406_v41 }
 0x3f4   :  { %410 = vrot.lane.b32.xlu1 %v408_v42, %s2070_s14 }
 0x466   :  { %v411_v43 = vpop.permute.xlu1 %410 }
 0x467   :  { %v413_v44 = vadd.f32 %v411_v43, %v189_v35 }
 0x469   :  { %1947 = vtanh.f32 %v413_v44 }
 0x476   :  { %v1948_v51 = vpop.eup %1947 }
 0x477   :  { %417 = vrot.lane.b32.xlu0 %v1948_v51, %s2071_s2 }
 0x4e9   :  { %v418_v53 = vpop.permute.xlu0 %417 }
 0x4ea   :  { %v420_v55 = vmul.f32 %v418_v53, %v415_v52 }
 0x4ec   :  { %v422_v56 = vadd.f32 %v421_v54, %v420_v55 }
 0x4ee   :  { %424 = vrot.lane.b32.xlu1 %v422_v56, %s2071_s2 }
 0x560   :  { %v425_v57 = vpop.permute.xlu1 %424 }
 0x561   :  { %1872 = vmatmul.mubr.msk.f32.vlgmr.msra.gmra.mxu0 %vm222_vm3, %v425_v57 }
 0x562   :  { %1886 = vmatpush3.msra.mxu0 %v2122_v1  ;;  %1893 = vmatprep.mubr.msk.f32.mxu0 %vm2069_vm0, %v2068_v0 }
 0x563   :  { %1887 = vmatprep.subr.mxu0 %v2068_v0 }
 0x564   :  { %1888 = vmatpush3.msra.mxu0 %v2124_v2 }
 0x565   :  { %1889 = vmatprep.subr.mxu0 %v2068_v0 }
 0x566   :  { %1890 = vmatpush3.msra.mxu0 %v2137_v6 }
 0x567   :  { %1891 = vmatprep.subr.mxu0 %v2068_v0 }
 0x568   :  { %1892 = vmatpush3.msra.mxu0 %v2143_v7 }
 0x569   :  { %1907 = vmatprep.subr.mxu0 %v2068_v0 }
 0x621   :  { %v494_v3 = vpop.f32.mrf.mxu0 }
 0x622   :  { %v495_v4 = vadd.f32 %v2172_v8, %v494_v3 }
 0x623   :  { %v1873_v5 = vpop.f32.mrf.mxu0 }
 0x624   :  { %506 = vrot.lane.b32.xlu0 %v495_v4, %s2070_s14  ;;  %v498_v10 = vadd.f32 %v495_v4, %v194_v9 }
 0x626   :  { %v1754_v11 = vmul.f32 -1.442695, %v498_v10 }
 0x628   :  { %1949 = vpow2.f32 %v1754_v11 }
 0x635   :  { %v1950_v12 = vpop.eup %1949 }
 0x636   :  { %v502_v14 = vadd.f32 1.0, %v1950_v12 }
 0x638   :  { %1951 = vrcp.f32 %v502_v14 }
 0x645   :  { %v1952_v15 = vpop.eup %1951 }
 0x646   :  { %v516_v21 = vsub.f32 1.0, %v1952_v15  ;;  %v522_v23 = vmul.f32 %v1952_v15, %v422_v56 }
 0x696   :  { %v507_v16 = vpop.permute.xlu0 %506 }
 0x697   :  { %v509_v17 = vmul.f32 %v1952_v15, %v507_v16 }
 0x699   :  { %511 = vrot.lane.b32.xlu1 %v509_v17, %s2070_s14 }
 0x70b   :  { %v512_v18 = vpop.permute.xlu1 %511 }
 0x70c   :  { %v514_v19 = vadd.f32 %v512_v18, %v194_v9 }
 0x70e   :  { %1953 = vtanh.f32 %v514_v19 }
 0x71b   :  { %v1954_v20 = vpop.eup %1953 }
 0x71c   :  { %518 = vrot.lane.b32.xlu0 %v1954_v20, %s2071_s2 }
 0x78e   :  { %v519_v22 = vpop.permute.xlu0 %518 }
 0x78f   :  { %v521_v24 = vmul.f32 %v519_v22, %v516_v21 }
 0x791   :  { %v523_v25 = vadd.f32 %v522_v23, %v521_v24 }
 0x793   :  { %525 = vrot.lane.b32.xlu1 %v523_v25, %s2071_s2 }
 0x805   :  { %v526_v26 = vpop.permute.xlu1 %525 }
 0x806   :  { %1883 = vmatmul.mubr.msk.f32.vlgmr.msra.gmra.mxu1 %vm222_vm3, %v526_v26 }
 0x807   :  { %1897 = vmatpush3.msra.mxu1 %v2122_v1  ;;  %1904 = vmatprep.mubr.msk.f32.mxu1 %vm2069_vm0, %v2068_v0 }
 0x808   :  { %1898 = vmatprep.subr.mxu1 %v2068_v0 }
 0x809   :  { %1899 = vmatpush3.msra.mxu1 %v2124_v2 }
 0x80a   :  { %1900 = vmatprep.subr.mxu1 %v2068_v0 }
 0x80b   :  { %1901 = vmatpush3.msra.mxu1 %v2137_v6 }
 0x80c   :  { %1902 = vmatprep.subr.mxu1 %v2068_v0 }
 0x80d   :  { %1903 = vmatpush3.msra.mxu1 %v2143_v7 }
 0x80e   :  { %1918 = vmatprep.subr.mxu1 %v2068_v0 }
 0x8c6   :  { %v595_v27 = vpop.f32.mrf.mxu1 }
 0x8c7   :  { %v596_v28 = vadd.f32 %v2172_v8, %v595_v27 }
 0x8c8   :  { %v1884_v29 = vpop.f32.mrf.mxu1 }
 0x8c9   :  { %607 = vrot.lane.b32.xlu0 %v596_v28, %s2070_s14  ;;  %v599_v31 = vadd.f32 %v596_v28, %v199_v30 }
 0x8cb   :  { %v1756_v32 = vmul.f32 -1.442695, %v599_v31  ;;  %v214_v31 = vadd.f32 %v2179_v13, %v2245_v63 }
 0x8cd   :  { %1955 = vpow2.f32 %v1756_v32 }
 0x8da   :  { %v1956_v33 = vpop.eup %1955 }
 0x8db   :  { %v603_v34 = vadd.f32 1.0, %v1956_v33 }
 0x8dd   :  { %1957 = vrcp.f32 %v603_v34 }
 0x8ea   :  { %v1958_v35 = vpop.eup %1957 }
 0x8eb   :  { %v617_v41 = vsub.f32 1.0, %v1958_v35  ;;  %v623_v43 = vmul.f32 %v1958_v35, %v523_v25 }
 0x93b   :  { %v608_v36 = vpop.permute.xlu0 %607 }
 0x93c   :  { %v610_v37 = vmul.f32 %v1958_v35, %v608_v36 }
 0x93e   :  { %612 = vrot.lane.b32.xlu1 %v610_v37, %s2070_s14 }
 0x9b0   :  { %v613_v38 = vpop.permute.xlu1 %612 }
 0x9b1   :  { %v615_v39 = vadd.f32 %v613_v38, %v199_v30 }
 0x9b3   :  { %1959 = vtanh.f32 %v615_v39 }
 0x9c0   :  { %v1960_v40 = vpop.eup %1959 }
 0x9c1   :  { %619 = vrot.lane.b32.xlu0 %v1960_v40, %s2071_s2 }
 0xa33   :  { %v620_v42 = vpop.permute.xlu0 %619 }
 0xa34   :  { %v622_v44 = vmul.f32 %v620_v42, %v617_v41 }
 0xa36   :  { %v624_v45 = vadd.f32 %v623_v43, %v622_v44 }
 0xa38   :  { %626 = vrot.lane.b32.xlu1 %v624_v45, %s2071_s2 }
 0xaaa   :  { %v627_v46 = vpop.permute.xlu1 %626 }
 0xaab   :  { %1894 = vmatmul.mubr.msk.f32.vlgmr.msra.gmra.mxu0 %vm222_vm3, %v627_v46 }
 0xaac   :  { %1908 = vmatpush3.msra.mxu0 %v2122_v1  ;;  %1915 = vmatprep.mubr.msk.f32.mxu0 %vm2069_vm0, %v2068_v0 }
 0xaad   :  { %1909 = vmatprep.subr.mxu0 %v2068_v0 }
 0xaae   :  { %1910 = vmatpush3.msra.mxu0 %v2124_v2 }
 0xaaf   :  { %1911 = vmatprep.subr.mxu0 %v2068_v0 }
 0xab0   :  { %1912 = vmatpush3.msra.mxu0 %v2137_v6 }
 0xab1   :  { %1913 = vmatprep.subr.mxu0 %v2068_v0 }
 0xab2   :  { %1914 = vmatpush3.msra.mxu0 %v2143_v7 }
 0xb6b   :  { %v696_v47 = vpop.f32.mrf.mxu0 }
 0xb6c   :  { %v697_v48 = vadd.f32 %v2172_v8, %v696_v47 }
 0xb6d   :  { %v1895_v49 = vpop.f32.mrf.mxu0 }
 0xb6e   :  { %708 = vrot.lane.b32.xlu0 %v697_v48, %s2070_s14  ;;  %v700_v51 = vadd.f32 %v697_v48, %v204_v50 }
 0xb70   :  { %v1758_v52 = vmul.f32 -1.442695, %v700_v51 }
 0xb72   :  { %1961 = vpow2.f32 %v1758_v52 }
 0xb7f   :  { %v1962_v53 = vpop.eup %1961 }
 0xb80   :  { %v704_v54 = vadd.f32 1.0, %v1962_v53 }
 0xb82   :  { %1963 = vrcp.f32 %v704_v54 }
 0xb8f   :  { %v1964_v55 = vpop.eup %1963 }
 0xb90   :  { %v718_v4 = vsub.f32 1.0, %v1964_v55  ;;  %v724_v61 = vmul.f32 %v1964_v55, %v624_v45 }
 0xbe0   :  { %v709_v56 = vpop.permute.xlu0 %708 }
 0xbe1   :  { %v711_v57 = vmul.f32 %v1964_v55, %v709_v56 }
 0xbe3   :  { %713 = vrot.lane.b32.xlu1 %v711_v57, %s2070_s14 }
 0xc55   :  { %v714_v58 = vpop.permute.xlu1 %713 }
 0xc56   :  { %v716_v59 = vadd.f32 %v714_v58, %v204_v50  ;;  %v219_v50 = vadd.f32 %v2243_v62, %v2179_v13  ;;  %v2333_v62 = vld [vmem:[%s2485_s5 + $0x28] sm:$0xff] }
 0xc58   :  { %1965 = vtanh.f32 %v716_v59 }
 0xc65   :  { %v1966_v3 = vpop.eup %1965 }
 0xc66   :  { %720 = vrot.lane.b32.xlu0 %v1966_v3, %s2071_s2  ;;  %v2339_v3 = vld [vmem:[%s2485_s5 + $0x20] sm:$0xff] }
 0xcd8   :  { %v721_v5 = vpop.permute.xlu0 %720 }
 0xcd9   :  { %v723_v9 = vmul.f32 %v721_v5, %v718_v4  ;;  %v2346_v4 = vld [vmem:[%s2485_s5 + $0x18] sm:$0xff]  ;;  %v2353_v5 = vld [vmem:[%s2485_s5 + $0x10] sm:$0xff] }
 0xcdb   :  { %v725_v10 = vadd.f32 %v724_v61, %v723_v9  ;;  %v2360_v61 = vld [vmem:[%s2485_s5 + $0x8] sm:$0xff]  ;;  %v2367_v9 = vld [vmem:[%s2485_s5] sm:$0xff] }
 0xcdd   :  { %727 = vrot.lane.b32.xlu1 %v725_v10, %s2071_s2 }
 0xd4f   :  { %v728_v11 = vpop.permute.xlu1 %727 }
 0xd50   :  { %1905 = vmatmul.mubr.msk.f32.vlgmr.msra.gmra.mxu1 %vm222_vm3, %v728_v11 }
 0xd51   :  { %1919 = vmatpush3.msra.mxu1 %v2122_v1  ;;  %1926 = vmatprep.mubr.msk.f32.mxu1 %vm2069_vm0, %v2068_v0  ;;  %v209_v1 = vadd.f32 %v2239_v60, %v2179_v13  ;;  %v2328_v13 = vld [vmem:[%s2485_s5 + $0x30] sm:$0xff] }
 0xd52   :  { %1920 = vmatprep.subr.mxu1 %v2068_v0 }
 0xd53   :  { %1921 = vmatpush3.msra.mxu1 %v2124_v2 }
 0xd54   :  { %1922 = vmatprep.subr.mxu1 %v2068_v0 }
 0xd55   :  { %1923 = vmatpush3.msra.mxu1 %v2137_v6 }
 0xd56   :  { %1924 = vmatprep.subr.mxu1 %v2068_v0 }
 0xd57   :  { %1925 = vmatpush3.msra.mxu1 %v2143_v7 }
 0xe10   :  { %v797_v12 = vpop.f32.mrf.mxu1 }
 0xe11   :  { %v798_v14 = vadd.f32 %v2172_v8, %v797_v12 }
 0xe12   :  { %v1906_v15 = vpop.f32.mrf.mxu1 }
 0xe13   :  { %809 = vrot.lane.b32.xlu0 %v798_v14, %s2070_s14  ;;  %v801_v16 = vadd.f32 %v798_v14, %v209_v1 }
 0xe15   :  { %v1760_v17 = vmul.f32 -1.442695, %v801_v16 }
 0xe17   :  { %1967 = vpow2.f32 %v1760_v17  ;;  %v62_v17 = vlaneseq }
 0xe24   :  { %v1968_v2 = vpop.eup %1967 }
 0xe25   :  { %v805_v18 = vadd.f32 1.0, %v1968_v2  ;;  %v63_v2 = vshrl.u32 %v62_v17, 7 }
 0xe27   :  { %1969 = vrcp.f32 %v805_v18  ;;  %v68_v18 = vsub.s32 1, %v63_v2 }
 0xe34   :  { %v1970_v6 = vpop.eup %1969 }
 0xe35   :  { %v819_v23 = vsub.f32 1.0, %v1970_v6  ;;  %v825_v60 = vmul.f32 %v1970_v6, %v725_v10 }
 0xe85   :  { %v810_v19 = vpop.permute.xlu0 %809 }
 0xe86   :  { %v812_v20 = vmul.f32 %v1970_v6, %v810_v19  ;;  %v60_v6 = vld [vmem:[%s2486_s6] sm:$0x3]  ;;  %s2072_s6 = smov [#allocation5]  }
 0xe87   :  { %v2393_v19 = vrot.slane %v60_v6, %v68_v18  ;;  %s1727_s21 = sshll.u32 %s2072_s6, 4  ;;  %s1728_s21 = int_to_ptr.vmem [resolvable:$true] %s1727_s21 }
 0xe88   :  { %814 = vrot.lane.b32.xlu1 %v812_v20, %s2070_s14  ;;  %p2046_p6 = scmp.lt.s32.totalorder %s1728_s21, %s1728_s21 }
 0xefa   :  { %v815_v7 = vpop.permute.xlu1 %814 }
 0xefb   :  { %v817_v21 = vadd.f32 %v815_v7, %v209_v1 }
 0xefd   :  { %1971 = vtanh.f32 %v817_v21 }
 0xf0a   :  { %v1972_v22 = vpop.eup %1971 }
 0xf0b   :  { %821 = vrot.lane.b32.xlu0 %v1972_v22, %s2071_s2  ;;  %v64_v22 = vsub.s32 0, %v63_v2 }
 0xf7d   :  { %v822_v24 = vpop.permute.xlu0 %821 }
 0xf7e   :  { %v824_v25 = vmul.f32 %v822_v24, %v819_v23  ;;  %v2397_v23 = vrot.slane %v60_v6, %v64_v22 }
 0xf80   :  { %v826_v26 = vadd.f32 %v825_v60, %v824_v25 }
 0xf82   :  { %828 = vrot.lane.b32.xlu1 %v826_v26, %s2071_s2 }
 0xff4   :  { %v829_v27 = vpop.permute.xlu1 %828 }
 0xff5   :  { %1916 = vmatmul.mubr.msk.f32.vlgmr.msra.gmra.mxu0 %vm222_vm3, %v829_v27 }
 0xff6   :  { %1098 = vmatprep.mubr.f32.mxu0 %v2068_v0 }
0x10b5   :  { %v898_v28 = vpop.f32.mrf.mxu0 }
0x10b6   :  { %v899_v29 = vadd.f32 %v2172_v8, %v898_v28 }
0x10b7   :  { %v1917_v30 = vpop.f32.mrf.mxu0 }
0x10b8   :  { %910 = vrot.lane.b32.xlu0 %v899_v29, %s2070_s14  ;;  %v902_v32 = vadd.f32 %v899_v29, %v214_v31 }
0x10ba   :  { %v1762_v33 = vmul.f32 -1.442695, %v902_v32 }
0x10bc   :  { %1973 = vpow2.f32 %v1762_v33 }
0x10c9   :  { %v1974_v34 = vpop.eup %1973 }
0x10ca   :  { %v906_v35 = vadd.f32 1.0, %v1974_v34 }
0x10cc   :  { %1975 = vrcp.f32 %v906_v35 }
0x10d9   :  { %v1976_v36 = vpop.eup %1975 }
0x10da   :  { %v920_v42 = vsub.f32 1.0, %v1976_v36  ;;  %v926_v63 = vmul.f32 %v1976_v36, %v826_v26 }
0x112a   :  { %v911_v37 = vpop.permute.xlu0 %910 }
0x112b   :  { %v913_v38 = vmul.f32 %v1976_v36, %v911_v37 }
0x112d   :  { %915 = vrot.lane.b32.xlu1 %v913_v38, %s2070_s14 }
0x119f   :  { %v916_v39 = vpop.permute.xlu1 %915 }
0x11a0   :  { %v918_v40 = vadd.f32 %v916_v39, %v214_v31 }
0x11a2   :  { %1977 = vtanh.f32 %v918_v40 }
0x11af   :  { %v1978_v41 = vpop.eup %1977 }
0x11b0   :  { %922 = vrot.lane.b32.xlu0 %v1978_v41, %s2071_s2 }
0x1222   :  { %v923_v43 = vpop.permute.xlu0 %922 }
0x1223   :  { %v925_v44 = vmul.f32 %v923_v43, %v920_v42 }
0x1225   :  { %v927_v45 = vadd.f32 %v926_v63, %v925_v44 }
0x1227   :  { %929 = vrot.lane.b32.xlu1 %v927_v45, %s2071_s2 }
0x1299   :  { %v930_v46 = vpop.permute.xlu1 %929 }
0x129a   :  { %1927 = vmatmul.mubr.msk.f32.vlgmr.msra.gmra.mxu1 %vm222_vm3, %v930_v46 }
0x129b   :  { %1200 = vmatprep.mubr.f32.mxu1 %v2068_v0 }
0x135a   :  { %v999_v47 = vpop.f32.mrf.mxu1 }
0x135b   :  { %v1000_v48 = vadd.f32 %v2172_v8, %v999_v47  ;;  %v2323_v8 = vld [vmem:[%s2485_s5 + $0x38] sm:$0xff] }
0x135c   :  { %v1928_v49 = vpop.f32.mrf.mxu1  ;;  %1058 = vmatprep.subr.mxu0 %v2323_v8  ;;  %1160 = vmatprep.subr.mxu1 %v2323_v8 }
0x135d   :  { %1011 = vrot.lane.b32.xlu0 %v1000_v48, %s2070_s14  ;;  %v1003_v51 = vadd.f32 %v1000_v48, %v219_v50  ;;  %1059 = vmatpush1.msra.mxu0 %v2328_v13 }
0x135e   :  { %1161 = vmatpush1.msra.mxu1 %v2328_v13  ;;  %1060 = vmatprep.subr.mxu0 %v2333_v62 }
0x135f   :  { %v1764_v52 = vmul.f32 -1.442695, %v1003_v51  ;;  %1162 = vmatprep.subr.mxu1 %v2333_v62  ;;  %1061 = vmatpush1.msra.mxu0 %v2339_v3 }
0x1360   :  { %1163 = vmatpush1.msra.mxu1 %v2339_v3  ;;  %1062 = vmatprep.subr.mxu0 %v2346_v4 }
0x1361   :  { %1979 = vpow2.f32 %v1764_v52  ;;  %1164 = vmatprep.subr.mxu1 %v2346_v4  ;;  %1063 = vmatpush1.msra.mxu0 %v2353_v5 }
0x1362   :  { %1165 = vmatpush1.msra.mxu1 %v2353_v5  ;;  %1064 = vmatprep.subr.mxu0 %v2360_v61 }
0x1363   :  { %1166 = vmatprep.subr.mxu1 %v2360_v61  ;;  %1065 = vmatpush1.msra.mxu0 %v2367_v9 }
0x1364   :  { %1167 = vmatpush1.msra.mxu1 %v2367_v9  ;;  %1262 = vmatprep.subr.mxu0 %v2323_v8 }
0x1365   :  { %1364 = vmatprep.subr.mxu1 %v2323_v8 }
0x136e   :  { %v1980_v53 = vpop.eup %1979 }
0x136f   :  { %v1007_v54 = vadd.f32 1.0, %v1980_v53 }
0x1371   :  { %1981 = vrcp.f32 %v1007_v54 }
0x137e   :  { %v1982_v55 = vpop.eup %1981 }
0x137f   :  { %v1021_v11 = vsub.f32 1.0, %v1982_v55  ;;  %v1027_v14 = vmul.f32 %v1982_v55, %v927_v45 }
0x13cf   :  { %v1012_v56 = vpop.permute.xlu0 %1011 }
0x13d0   :  { %v1014_v57 = vmul.f32 %v1982_v55, %v1012_v56 }
0x13d2   :  { %1016 = vrot.lane.b32.xlu1 %v1014_v57, %s2070_s14 }
0x1444   :  { %v1017_v58 = vpop.permute.xlu1 %1016 }
0x1445   :  { %v1019_v59 = vadd.f32 %v1017_v58, %v219_v50 }
0x1447   :  { %1983 = vtanh.f32 %v1019_v59 }
0x1454   :  { %v1984_v10 = vpop.eup %1983 }
0x1455   :  { %1023 = vrot.lane.b32.xlu0 %v1984_v10, %s2071_s2 }
0x14c7   :  { %v1024_v12 = vpop.permute.xlu0 %1023 }
0x14c8   :  { %v1026_v15 = vmul.f32 %v1024_v12, %v1021_v11 }
0x14ca   :  { %v1028_v1 = vadd.f32 %v1027_v14, %v1026_v15 }
0x14cc   :  { %1030 = vrot.lane.b32.xlu1 %v1028_v1, %s2071_s2 }
0x153e   :  { %v1031_v16 = vpop.permute.xlu1 %1030 }
0x153f   :  { %1765 = vmatmul.mubr.msk.f32.vlgmr.msra.gmra.mxu0 %vm222_vm3, %v1031_v16 }
0x1540   :  { %1263 = vmatpush1.msra.mxu0 %v2328_v13  ;;  %1302 = vmatprep.mubr.f32.mxu0 %v2068_v0 }
0x1541   :  { %1264 = vmatprep.subr.mxu0 %v2333_v62 }
0x1542   :  { %1265 = vmatpush1.msra.mxu0 %v2339_v3 }
0x1543   :  { %1266 = vmatprep.subr.mxu0 %v2346_v4 }
0x1544   :  { %1267 = vmatpush1.msra.mxu0 %v2353_v5 }
0x1545   :  { %1268 = vmatprep.subr.mxu0 %v2360_v61 }
0x1546   :  { %1269 = vmatpush1.msra.mxu0 %v2367_v9 }
0x1547   :  { %1466 = vmatprep.subr.mxu0 %v2323_v8 }
0x15ff   :  { %v1100_v20 = vpop.f32.mrf.mxu0 }
0x1600   :  { %v1101_v24 = vadd.f32 %v1100_v20, %v2397_v23 }
0x1601   :  { %v1102_v7 = vpop.f32.mrf.mxu0 }
0x1602   :  { %v1103_v21 = vadd.f32 %v1102_v7, %v2393_v19 }
0x1604   :  { %1113 = vrot.lane.b32.xlu0 %v1103_v21, %s2070_s14  ;;  %v1105_v60 = vadd.f32 %v1103_v21, %v1101_v24 }
0x1606   :  { %v1766_v25 = vmul.f32 -1.442695, %v1105_v60 }
0x1608   :  { %1985 = vpow2.f32 %v1766_v25 }
0x1615   :  { %v1986_v26 = vpop.eup %1985 }
0x1616   :  { %v1109_v27 = vadd.f32 1.0, %v1986_v26 }
0x1618   :  { %1987 = vrcp.f32 %v1109_v27 }
0x1625   :  { %v1988_v28 = vpop.eup %1987 }
0x1626   :  { %v1123_v34 = vsub.f32 1.0, %v1988_v28  ;;  %v1129_v36 = vmul.f32 %v1988_v28, %v1028_v1 }
0x1676   :  { %v1114_v29 = vpop.permute.xlu0 %1113 }
0x1677   :  { %v1116_v30 = vmul.f32 %v1988_v28, %v1114_v29 }
0x1679   :  { %1118 = vrot.lane.b32.xlu1 %v1116_v30, %s2070_s14 }
0x16eb   :  { %v1119_v31 = vpop.permute.xlu1 %1118 }
0x16ec   :  { %v1121_v32 = vadd.f32 %v1119_v31, %v1101_v24 }
0x16ee   :  { %1989 = vtanh.f32 %v1121_v32 }
0x16fb   :  { %v1990_v33 = vpop.eup %1989 }
0x16fc   :  { %1125 = vrot.lane.b32.xlu0 %v1990_v33, %s2071_s2 }
0x176e   :  { %v1126_v35 = vpop.permute.xlu0 %1125 }
0x176f   :  { %v1128_v37 = vmul.f32 %v1126_v35, %v1123_v34 }
0x1771   :  { %v1130_v38 = vadd.f32 %v1129_v36, %v1128_v37 }
0x1773   :  { %1132 = vrot.lane.b32.xlu1 %v1130_v38, %s2071_s2 }
0x17e5   :  { %v1133_v39 = vpop.permute.xlu1 %1132 }
0x17e6   :  { %1767 = vmatmul.mubr.msk.f32.vlgmr.msra.gmra.mxu1 %vm222_vm3, %v1133_v39 }
0x17e7   :  { %1365 = vmatpush1.msra.mxu1 %v2328_v13  ;;  %1404 = vmatprep.mubr.f32.mxu1 %v2068_v0 }
0x17e8   :  { %1366 = vmatprep.subr.mxu1 %v2333_v62 }
0x17e9   :  { %1367 = vmatpush1.msra.mxu1 %v2339_v3 }
0x17ea   :  { %1368 = vmatprep.subr.mxu1 %v2346_v4 }
0x17eb   :  { %1369 = vmatpush1.msra.mxu1 %v2353_v5 }
0x17ec   :  { %1370 = vmatprep.subr.mxu1 %v2360_v61 }
0x17ed   :  { %1371 = vmatpush1.msra.mxu1 %v2367_v9 }
0x17ee   :  { %1568 = vmatprep.subr.mxu1 %v2323_v8 }
0x18a6   :  { %v1202_v40 = vpop.f32.mrf.mxu1 }
0x18a7   :  { %v1203_v41 = vadd.f32 %v1202_v40, %v2397_v23 }
0x18a8   :  { %v1204_v42 = vpop.f32.mrf.mxu1 }
0x18a9   :  { %1716 = vst [vmem:[#allocation5] sm:$0xff] %v1203_v41  ;;  %v1205_v43 = vadd.f32 %v1204_v42, %v2393_v19 }
0x18ab   :  { %1215 = vrot.lane.b32.xlu0 %v1205_v43, %s2070_s14  ;;  %v1207_v63 = vadd.f32 %v1205_v43, %v1203_v41 }
0x18ad   :  { %v1768_v44 = vmul.f32 -1.442695, %v1207_v63 }
0x18af   :  { %1991 = vpow2.f32 %v1768_v44 }
0x18bc   :  { %v1992_v45 = vpop.eup %1991 }
0x18bd   :  { %v1211_v46 = vadd.f32 1.0, %v1992_v45 }
0x18bf   :  { %1993 = vrcp.f32 %v1211_v46 }
0x18cc   :  { %v1994_v47 = vpop.eup %1993 }
0x18cd   :  { %v1225_v53 = vsub.f32 1.0, %v1994_v47  ;;  %v1231_v55 = vmul.f32 %v1994_v47, %v1130_v38 }
0x191d   :  { %v1216_v48 = vpop.permute.xlu0 %1215 }
0x191e   :  { %v1218_v49 = vmul.f32 %v1994_v47, %v1216_v48 }
0x1920   :  { %1220 = vrot.lane.b32.xlu1 %v1218_v49, %s2070_s14 }
0x1992   :  { %v1221_v50 = vpop.permute.xlu1 %1220 }
0x1993   :  { %v1223_v51 = vadd.f32 %v1221_v50, %v1203_v41 }
0x1995   :  { %1995 = vtanh.f32 %v1223_v51 }
0x19a2   :  { %v1996_v52 = vpop.eup %1995 }
0x19a3   :  { %1227 = vrot.lane.b32.xlu0 %v1996_v52, %s2071_s2 }
0x1a15   :  { %v1228_v54 = vpop.permute.xlu0 %1227 }
0x1a16   :  { %v1230_v56 = vmul.f32 %v1228_v54, %v1225_v53 }
0x1a18   :  { %v1232_v57 = vadd.f32 %v1231_v55, %v1230_v56 }
0x1a1a   :  { %1234 = vrot.lane.b32.xlu1 %v1232_v57, %s2071_s2 }
0x1a8c   :  { %v1235_v58 = vpop.permute.xlu1 %1234 }
0x1a8d   :  { %1769 = vmatmul.mubr.msk.f32.vlgmr.msra.gmra.mxu0 %vm222_vm3, %v1235_v58 }
0x1a8e   :  { %1467 = vmatpush1.msra.mxu0 %v2328_v13  ;;  %1506 = vmatprep.mubr.f32.mxu0 %v2068_v0 }
0x1a8f   :  { %1468 = vmatprep.subr.mxu0 %v2333_v62 }
0x1a90   :  { %1469 = vmatpush1.msra.mxu0 %v2339_v3 }
0x1a91   :  { %1470 = vmatprep.subr.mxu0 %v2346_v4 }
0x1a92   :  { %1471 = vmatpush1.msra.mxu0 %v2353_v5 }
0x1a93   :  { %1472 = vmatprep.subr.mxu0 %v2360_v61 }
0x1a94   :  { %1473 = vmatpush1.msra.mxu0 %v2367_v9 }
0x1a95   :  { %1670 = vmatprep.subr.mxu0 %v2323_v8 }
0x1b4d   :  { %v1304_v59 = vpop.f32.mrf.mxu0 }
0x1b4e   :  { %v1305_v10 = vadd.f32 %v1304_v59, %v2397_v23 }
0x1b4f   :  { %v1306_v11 = vpop.f32.mrf.mxu0 }
0x1b50   :  { %1717 = vst [vmem:[#allocation5 + $0x8] sm:$0xff] %v1305_v10  ;;  %v1307_v12 = vadd.f32 %v1306_v11, %v2393_v19 }
0x1b52   :  { %1317 = vrot.lane.b32.xlu0 %v1307_v12, %s2070_s14  ;;  %v1309_v14 = vadd.f32 %v1307_v12, %v1305_v10 }
0x1b54   :  { %v1770_v15 = vmul.f32 -1.442695, %v1309_v14 }
0x1b56   :  { %1997 = vpow2.f32 %v1770_v15 }
0x1b63   :  { %v1998_v1 = vpop.eup %1997 }
0x1b64   :  { %v1313_v16 = vadd.f32 1.0, %v1998_v1 }
0x1b66   :  { %1999 = vrcp.f32 %v1313_v16 }
0x1b73   :  { %v2000_v17 = vpop.eup %1999 }
0x1b74   :  { %v1327_v7 = vsub.f32 1.0, %v2000_v17  ;;  %v1333_v22 = vmul.f32 %v2000_v17, %v1232_v57 }
0x1bc4   :  { %v1318_v2 = vpop.permute.xlu0 %1317 }
0x1bc5   :  { %v1320_v18 = vmul.f32 %v2000_v17, %v1318_v2 }
0x1bc7   :  { %1322 = vrot.lane.b32.xlu1 %v1320_v18, %s2070_s14 }
0x1c39   :  { %v1323_v8 = vpop.permute.xlu1 %1322 }
0x1c3a   :  { %v1325_v6 = vadd.f32 %v1323_v8, %v1305_v10 }
0x1c3c   :  { %2001 = vtanh.f32 %v1325_v6 }
0x1c49   :  { %v2002_v20 = vpop.eup %2001 }
0x1c4a   :  { %1329 = vrot.lane.b32.xlu0 %v2002_v20, %s2071_s2 }
0x1cbc   :  { %v1330_v21 = vpop.permute.xlu0 %1329 }
0x1cbd   :  { %v1332_v24 = vmul.f32 %v1330_v21, %v1327_v7 }
0x1cbf   :  { %v1334_v60 = vadd.f32 %v1333_v22, %v1332_v24 }
0x1cc1   :  { %1336 = vrot.lane.b32.xlu1 %v1334_v60, %s2071_s2 }
0x1d33   :  { %v1337_v25 = vpop.permute.xlu1 %1336 }
0x1d34   :  { %1771 = vmatmul.mubr.msk.f32.vlgmr.msra.gmra.mxu1 %vm222_vm3, %v1337_v25 }
0x1d35   :  { %1569 = vmatpush1.msra.mxu1 %v2328_v13  ;;  %1608 = vmatprep.mubr.f32.mxu1 %v2068_v0 }
0x1d36   :  { %1570 = vmatprep.subr.mxu1 %v2333_v62 }
0x1d37   :  { %1571 = vmatpush1.msra.mxu1 %v2339_v3 }
0x1d38   :  { %1572 = vmatprep.subr.mxu1 %v2346_v4 }
0x1d39   :  { %1573 = vmatpush1.msra.mxu1 %v2353_v5 }
0x1d3a   :  { %1574 = vmatprep.subr.mxu1 %v2360_v61 }
0x1d3b   :  { %1575 = vmatpush1.msra.mxu1 %v2367_v9 }
0x1df4   :  { %v1406_v26 = vpop.f32.mrf.mxu1 }
0x1df5   :  { %v1407_v27 = vadd.f32 %v1406_v26, %v2397_v23 }
0x1df6   :  { %v1408_v28 = vpop.f32.mrf.mxu1 }
0x1df7   :  { %1718 = vst [vmem:[#allocation5 + $0x10] sm:$0xff] %v1407_v27  ;;  %v1409_v29 = vadd.f32 %v1408_v28, %v2393_v19 }
0x1df9   :  { %1419 = vrot.lane.b32.xlu0 %v1409_v29, %s2070_s14  ;;  %v1411_v30 = vadd.f32 %v1409_v29, %v1407_v27 }
0x1dfb   :  { %v1772_v31 = vmul.f32 -1.442695, %v1411_v30 }
0x1dfd   :  { %2003 = vpow2.f32 %v1772_v31 }
0x1e0a   :  { %v2004_v32 = vpop.eup %2003 }
0x1e0b   :  { %v1415_v33 = vadd.f32 1.0, %v2004_v32 }
0x1e0d   :  { %2005 = vrcp.f32 %v1415_v33 }
0x1e1a   :  { %v2006_v34 = vpop.eup %2005 }
0x1e1b   :  { %v1429_v40 = vsub.f32 1.0, %v2006_v34  ;;  %v1435_v42 = vmul.f32 %v2006_v34, %v1334_v60 }
0x1e6b   :  { %v1420_v35 = vpop.permute.xlu0 %1419 }
0x1e6c   :  { %v1422_v36 = vmul.f32 %v2006_v34, %v1420_v35 }
0x1e6e   :  { %1424 = vrot.lane.b32.xlu1 %v1422_v36, %s2070_s14 }
0x1ee0   :  { %v1425_v37 = vpop.permute.xlu1 %1424 }
0x1ee1   :  { %v1427_v38 = vadd.f32 %v1425_v37, %v1407_v27 }
0x1ee3   :  { %2007 = vtanh.f32 %v1427_v38 }
0x1ef0   :  { %v2008_v39 = vpop.eup %2007 }
0x1ef1   :  { %1431 = vrot.lane.b32.xlu0 %v2008_v39, %s2071_s2 }
0x1f63   :  { %v1432_v41 = vpop.permute.xlu0 %1431 }
0x1f64   :  { %v1434_v43 = vmul.f32 %v1432_v41, %v1429_v40 }
0x1f66   :  { %v1436_v63 = vadd.f32 %v1435_v42, %v1434_v43 }
0x1f68   :  { %1438 = vrot.lane.b32.xlu1 %v1436_v63, %s2071_s2 }
0x1fda   :  { %v1439_v44 = vpop.permute.xlu1 %1438 }
0x1fdb   :  { %1773 = vmatmul.mubr.msk.f32.vlgmr.msra.gmra.mxu0 %vm222_vm3, %v1439_v44 }
0x1fdc   :  { %1671 = vmatpush1.msra.mxu0 %v2328_v13  ;;  %1710 = vmatprep.mubr.f32.mxu0 %v2068_v0 }
0x1fdd   :  { %1672 = vmatprep.subr.mxu0 %v2333_v62 }
0x1fde   :  { %1673 = vmatpush1.msra.mxu0 %v2339_v3 }
0x1fdf   :  { %1674 = vmatprep.subr.mxu0 %v2346_v4 }
0x1fe0   :  { %1675 = vmatpush1.msra.mxu0 %v2353_v5 }
0x1fe1   :  { %1676 = vmatprep.subr.mxu0 %v2360_v61 }
0x1fe2   :  { %1677 = vmatpush1.msra.mxu0 %v2367_v9 }
0x209b   :  { %v1508_v45 = vpop.f32.mrf.mxu0 }
0x209c   :  { %v1509_v46 = vadd.f32 %v1508_v45, %v2397_v23 }
0x209d   :  { %v1510_v47 = vpop.f32.mrf.mxu0 }
0x209e   :  { %1719 = vst [vmem:[#allocation5 + $0x18] sm:$0xff] %v1509_v46  ;;  %v1511_v13 = vadd.f32 %v1510_v47, %v2393_v19 }
0x20a0   :  { %1521 = vrot.lane.b32.xlu0 %v1511_v13, %s2070_s14  ;;  %v1513_v0 = vadd.f32 %v1511_v13, %v1509_v46 }
0x20a2   :  { %v1774_v62 = vmul.f32 -1.442695, %v1513_v0 }
0x20a4   :  { %2009 = vpow2.f32 %v1774_v62 }
0x20b1   :  { %v2010_v3 = vpop.eup %2009 }
0x20b2   :  { %v1517_v4 = vadd.f32 1.0, %v2010_v3 }
0x20b4   :  { %2011 = vrcp.f32 %v1517_v4 }
0x20c1   :  { %v2012_v5 = vpop.eup %2011 }
0x20c2   :  { %v1531_v51 = vsub.f32 1.0, %v2012_v5  ;;  %v1537_v53 = vmul.f32 %v2012_v5, %v1436_v63 }
0x2112   :  { %v1522_v48 = vpop.permute.xlu0 %1521 }
0x2113   :  { %v1524_v61 = vmul.f32 %v2012_v5, %v1522_v48 }
0x2115   :  { %1526 = vrot.lane.b32.xlu1 %v1524_v61, %s2070_s14 }
0x2187   :  { %v1527_v9 = vpop.permute.xlu1 %1526 }
0x2188   :  { %v1529_v49 = vadd.f32 %v1527_v9, %v1509_v46 }
0x218a   :  { %2013 = vtanh.f32 %v1529_v49 }
0x2197   :  { %v2014_v50 = vpop.eup %2013 }
0x2198   :  { %1533 = vrot.lane.b32.xlu0 %v2014_v50, %s2071_s2 }
0x220a   :  { %v1534_v52 = vpop.permute.xlu0 %1533 }
0x220b   :  { %v1536_v54 = vmul.f32 %v1534_v52, %v1531_v51 }
0x220d   :  { %v1538_v55 = vadd.f32 %v1537_v53, %v1536_v54 }
0x220f   :  { %1540 = vrot.lane.b32.xlu1 %v1538_v55, %s2071_s2 }
0x2281   :  { %v1541_v56 = vpop.permute.xlu1 %1540 }
0x2282   :  { %1775 = vmatmul.mubr.msk.f32.vlgmr.msra.gmra.mxu1 %vm222_vm3, %v1541_v56 }
0x2342   :  { %v1610_v57 = vpop.f32.mrf.mxu1 }
0x2343   :  { %v1611_v58 = vadd.f32 %v1610_v57, %v2397_v23 }
0x2344   :  { %v1612_v59 = vpop.f32.mrf.mxu1 }
0x2345   :  { %1720 = vst [vmem:[#allocation5 + $0x20] sm:$0xff] %v1611_v58  ;;  %v1613_v10 = vadd.f32 %v1612_v59, %v2393_v19 }
0x2347   :  { %1623 = vrot.lane.b32.xlu0 %v1613_v10, %s2070_s14  ;;  %v1615_v11 = vadd.f32 %v1613_v10, %v1611_v58 }
0x2349   :  { %v1776_v12 = vmul.f32 -1.442695, %v1615_v11 }
0x234b   :  { %2015 = vpow2.f32 %v1776_v12 }
0x2358   :  { %v2016_v14 = vpop.eup %2015 }
0x2359   :  { %v1619_v15 = vadd.f32 1.0, %v2016_v14 }
0x235b   :  { %2017 = vrcp.f32 %v1619_v15 }
0x2368   :  { %v2018_v1 = vpop.eup %2017 }
0x2369   :  { %v1633_v19 = vsub.f32 1.0, %v2018_v1  ;;  %v1639_v20 = vmul.f32 %v2018_v1, %v1538_v55 }
0x23b9   :  { %v1624_v16 = vpop.permute.xlu0 %1623 }
0x23ba   :  { %v1626_v17 = vmul.f32 %v2018_v1, %v1624_v16 }
0x23bc   :  { %1628 = vrot.lane.b32.xlu1 %v1626_v17, %s2070_s14  ;;  %s2041_s14 = scalar_lea.vmem %s1728_s21, 768 }
0x23bd   :  { %p2042_p5 = scmp.ne.s32.totalorder %s1728_s21, %s2041_s14  ;;  %p2047_p7 = scmp.lt.s32.totalorder %s2041_s14, %s2041_s14 }
0x23bf   :  { %p2048_p8 = por %p2047_p7, %p2046_p6 }
0x23c1   :  { %p2049_p9 = pnand %p2048_p8, %p2042_p5 }
0x242e   :  { %v1629_v2 = vpop.permute.xlu1 %1628 }
0x242f   :  { %v1631_v18 = vadd.f32 %v1629_v2, %v1611_v58 }
0x2431   :  { %2019 = vtanh.f32 %v1631_v18 }
0x243e   :  { %v2020_v8 = vpop.eup %2019 }
0x243f   :  { %1635 = vrot.lane.b32.xlu0 %v2020_v8, %s2071_s2 }
0x24b1   :  { %v1636_v6 = vpop.permute.xlu0 %1635 }
0x24b2   :  { %v1638_v7 = vmul.f32 %v1636_v6, %v1633_v19 }
0x24b4   :  { %v1640_v21 = vadd.f32 %v1639_v20, %v1638_v7 }
0x24b6   :  { %1642 = vrot.lane.b32.xlu1 %v1640_v21, %s2071_s2 }
0x2528   :  { %v1643_v22 = vpop.permute.xlu1 %1642 }
0x2529   :  { %1777 = vmatmul.mubr.msk.f32.vlgmr.msra.gmra.mxu0 %vm222_vm3, %v1643_v22 }
0x25e9   :  { %v1712_v24 = vpop.f32.mrf.mxu0 }
0x25ea   :  { %v1713_v60 = vadd.f32 %v1712_v24, %v2397_v23 }
0x25eb   :  { %v1714_v25 = vpop.f32.mrf.mxu0 }
0x25ec   :  { %1721 = vst [vmem:[#allocation5 + $0x28] sm:$0xff] %v1713_v60 }
0x25ed   :  { %2052 = shalt.err (!%p2049_p9)
}
0x25ee   :  { %1733 = dma.vmem_to_hbm [thread:$0]  %s1728_s21, 768, %s2487_s7, [#allocation4], %s2066_s27, %s2066_s27, %s2067_s28  }
0x25ef   :  { %2063 = dma.done.wait [#allocation4], 768  }
0x25f0   :  { %2064 = vsyncadd [#allocation4], 4294966528 }
0x25f1   :  { %1737 = vsyncpa [#allocation3], 1 }
0x25f2   :  { %1738 = vsyncpa [#allocation4], 1 }

</bundles_post_ra>
